<compile_context>
chip_gen: v5e
topology: v5e:2x2
jax: 0.10.0
libtpu: 0.0.40
codegen_flags: <defaults>
</compile_context>

<pallas_src>
import math
from functools import partial

import jax
import jax.numpy as jnp
from jax.experimental import pallas as pl
from jax.experimental.pallas import tpu as pltpu


# ----------------------------------------------------------------------------
# Tiling helpers
# ----------------------------------------------------------------------------
def _round_up(x: int, m: int) -> int:
    return ((x + m - 1) // m) * m


def _tile(dim: int, target: int, align: int):
    """Pick a legal TPU tile.

    If `dim` fits in `target` we use the full dim (a block equal to the full
    array dim is always legal).  Otherwise we use an `align`-multiple tile and
    report the zero-padded dim so the grid divides evenly.
    Returns (tile, padded_dim).
    """
    if dim <= target:
        return dim, dim
    t = max(align, (target // align) * align)
    return t, _round_up(dim, t)


# ----------------------------------------------------------------------------
# Pallas kernels
# ----------------------------------------------------------------------------
def _linear_kernel(x_ref, w_ref, b_ref, o_ref, acc_ref, *, relu: bool):
    @pl.when(pl.program_id(2) == 0)
    def _():
        acc_ref[...] = jnp.zeros_like(acc_ref)

    acc_ref[...] += jnp.dot(x_ref[...].astype(jnp.bfloat16),
                            w_ref[...].astype(jnp.bfloat16),
                            preferred_element_type=jnp.float32)

    @pl.when(pl.program_id(2) == pl.num_programs(2) - 1)
    def _():
        y = acc_ref[...] + b_ref[...]
        if relu:
            y = jnp.maximum(y, 0.0)
        o_ref[...] = y.astype(o_ref.dtype)


def linear(x2d, w, b, relu=False, *, tm=256, tn=256, tk=512):
    """x2d: (M, K) f32, w: (K, N) bf16/f32, b: (N,) f32 -> (M, N) f32."""
    M, K = x2d.shape
    Kw, N = w.shape
    assert K == Kw
    tm, Mp = _tile(M, tm, 8)
    tn, Np = _tile(N, tn, 128)
    tk, Kp = _tile(K, tk, 128)
    x = x2d if (Mp == M and Kp == K) else jnp.pad(x2d, ((0, Mp - M), (0, Kp - K)))
    wp = w if (Kp == K and Np == N) else jnp.pad(w, ((0, Kp - K), (0, Np - N)))
    bp = b if Np == N else jnp.pad(b, (0, Np - N))
    grid = (Mp // tm, Np // tn, Kp // tk)
    # Tiles kept at 256/256/512 so double-buffered VMEM stays well inside v7x's
    # 64 MiB; on v6e/v5e this could be raised toward 512.
    out = pl.pallas_call(
        partial(_linear_kernel, relu=relu),
        out_shape=jax.ShapeDtypeStruct((Mp, Np), jnp.float32),
        grid=grid,
        in_specs=[
            pl.BlockSpec((tm, tk), lambda i, j, k: (i, k)),
            pl.BlockSpec((tk, tn), lambda i, j, k: (k, j)),
            pl.BlockSpec((1, tn), lambda i, j, k: (0, j)),
        ],
        out_specs=pl.BlockSpec((tm, tn), lambda i, j, k: (i, j)),
        scratch_shapes=[pltpu.VMEM((tm, tn), jnp.float32)],
        compiler_params=pltpu.CompilerParams(
            dimension_semantics=("parallel", "parallel", "arbitrary")),
    )(x, wp, bp.reshape(1, Np))
    if Mp != M or Np != N:
        out = out[:M, :N]
    return out


def _linear_add_ln_kernel(x_ref, w_ref, b_ref, r_ref, g_ref, bn_ref,
                          o_ref, acc_ref, *, eps: float):
    @pl.when(pl.program_id(1) == 0)
    def _():
        acc_ref[...] = jnp.zeros_like(acc_ref)

    acc_ref[...] += jnp.dot(x_ref[...].astype(jnp.bfloat16),
                            w_ref[...].astype(jnp.bfloat16),
                            preferred_element_type=jnp.float32)

    @pl.when(pl.program_id(1) == pl.num_programs(1) - 1)
    def _():
        # Fused: bias + residual add + LayerNorm (all f32 on the VPU/EUP).
        y = acc_ref[...] + b_ref[...] + r_ref[...]
        mean = jnp.mean(y, axis=-1, keepdims=True)
        var = jnp.mean((y - mean) ** 2, axis=-1, keepdims=True)
        yn = (y - mean) * jax.lax.rsqrt(var + eps)
        o_ref[...] = (yn * g_ref[...] + bn_ref[...]).astype(o_ref.dtype)


def linear_add_ln(x2d, w, b, res2d, gamma, beta, *, tm=256, tk=512, eps=1e-12):
    """LayerNorm(x2d @ w + b + res2d) fused in one kernel.

    Output feature dim is the full D so mean/var are exact (no N padding).
    """
    M, K = x2d.shape
    D = w.shape[1]
    tm, Mp = _tile(M, tm, 8)
    tk, Kp = _tile(K, tk, 128)
    x = x2d if (Mp == M and Kp == K) else jnp.pad(x2d, ((0, Mp - M), (0, Kp - K)))
    res = res2d if Mp == M else jnp.pad(res2d, ((0, Mp - M), (0, 0)))
    wp = w if Kp == K else jnp.pad(w, ((0, Kp - K), (0, 0)))
    grid = (Mp // tm, Kp // tk)
    out = pl.pallas_call(
        partial(_linear_add_ln_kernel, eps=eps),
        out_shape=jax.ShapeDtypeStruct((Mp, D), jnp.float32),
        grid=grid,
        in_specs=[
            pl.BlockSpec((tm, tk), lambda i, k: (i, k)),
            pl.BlockSpec((tk, D), lambda i, k: (k, 0)),
            pl.BlockSpec((1, D), lambda i, k: (0, 0)),
            pl.BlockSpec((tm, D), lambda i, k: (i, 0)),
            pl.BlockSpec((1, D), lambda i, k: (0, 0)),
            pl.BlockSpec((1, D), lambda i, k: (0, 0)),
        ],
        out_specs=pl.BlockSpec((tm, D), lambda i, k: (i, 0)),
        scratch_shapes=[pltpu.VMEM((tm, D), jnp.float32)],
        compiler_params=pltpu.CompilerParams(
            dimension_semantics=("parallel", "arbitrary")),
    )(x, wp, b.reshape(1, D), res, gamma.reshape(1, D), beta.reshape(1, D))
    return out[:M] if Mp != M else out


def _ffn_add_ln_kernel(x_ref, w1_ref, b1_ref, w2_ref, b2_ref, r_ref, g_ref,
                       bn_ref, o_ref, acc_ref, *, eps: float):
    @pl.when(pl.program_id(1) == 0)
    def _():
        acc_ref[...] = jnp.zeros_like(acc_ref)

    # One hidden-dim tile per step: relu(x @ w1_tile + b1_tile) @ w2_tile.
    h = jnp.dot(x_ref[...].astype(jnp.bfloat16), w1_ref[...].astype(jnp.bfloat16),
                preferred_element_type=jnp.float32) + b1_ref[...]
    h = jnp.maximum(h, 0.0)
    acc_ref[...] += jnp.dot(h.astype(jnp.bfloat16), w2_ref[...].astype(jnp.bfloat16),
                            preferred_element_type=jnp.float32)

    @pl.when(pl.program_id(1) == pl.num_programs(1) - 1)
    def _():
        y = acc_ref[...] + b2_ref[...] + r_ref[...]
        mean = jnp.mean(y, axis=-1, keepdims=True)
        var = jnp.mean((y - mean) ** 2, axis=-1, keepdims=True)
        yn = (y - mean) * jax.lax.rsqrt(var + eps)
        o_ref[...] = (yn * g_ref[...] + bn_ref[...]).astype(o_ref.dtype)


def ffn_add_ln(x2d, res2d, p, norm_p, *, tm=256, th=512, eps=1e-12):
    """LayerNorm(relu(x @ w1 + b1) @ w2 + b2 + res) with the hidden dim tiled."""
    M, D = x2d.shape
    Hd = p['w1'].shape[1]
    tm, Mp = _tile(M, tm, 8)
    th, Hp = _tile(Hd, th, 128)
    x = x2d if Mp == M else jnp.pad(x2d, ((0, Mp - M), (0, 0)))
    res = res2d if Mp == M else jnp.pad(res2d, ((0, Mp - M), (0, 0)))
    w1, b1, w2 = p['w1'], p['b1'], p['w2']
    if Hp != Hd:
        w1 = jnp.pad(w1, ((0, 0), (0, Hp - Hd)))
        b1 = jnp.pad(b1, (0, Hp - Hd))
        w2 = jnp.pad(w2, ((0, Hp - Hd), (0, 0)))
    grid = (Mp // tm, Hp // th)
    out = pl.pallas_call(
        partial(_ffn_add_ln_kernel, eps=eps),
        out_shape=jax.ShapeDtypeStruct((Mp, D), jnp.float32),
        grid=grid,
        in_specs=[
            pl.BlockSpec((tm, D), lambda i, h: (i, 0)),
            pl.BlockSpec((D, th), lambda i, h: (0, h)),
            pl.BlockSpec((1, th), lambda i, h: (0, h)),
            pl.BlockSpec((th, D), lambda i, h: (h, 0)),
            pl.BlockSpec((1, D), lambda i, h: (0, 0)),
            pl.BlockSpec((tm, D), lambda i, h: (i, 0)),
            pl.BlockSpec((1, D), lambda i, h: (0, 0)),
            pl.BlockSpec((1, D), lambda i, h: (0, 0)),
        ],
        out_specs=pl.BlockSpec((tm, D), lambda i, h: (i, 0)),
        scratch_shapes=[pltpu.VMEM((tm, D), jnp.float32)],
        compiler_params=pltpu.CompilerParams(
            dimension_semantics=("parallel", "arbitrary")),
    )(x, w1, b1.reshape(1, Hp), w2, p['b2'].reshape(1, D), res,
      norm_p['g'].reshape(1, D), norm_p['b'].reshape(1, D))
    return out[:M] if Mp != M else out


def _mha_kernel(q_ref, k_ref, v_ref, m_ref, o_ref, *, scale: float):
    # All heads of one batch element per grid step (batched dots over heads).
    q = q_ref[0].astype(jnp.bfloat16)        # (H, Lq, Dh)
    k = k_ref[0].astype(jnp.bfloat16)        # (H, Lk, Dh)
    v = v_ref[0].astype(jnp.bfloat16)        # (H, Lk, Dh)
    mask = m_ref[0, 0]                       # (Lq, Lk) int32, shared by heads
    s = jax.lax.dot_general(q, k, (((2,), (2,)), ((0,), (0,))),
                            preferred_element_type=jnp.float32) * scale
    s = jnp.where(mask[None, :, :] != 0, s, -1e9)      # masked_fill(mask==0, -1e9)
    s = s - jnp.max(s, axis=-1, keepdims=True)          # softmax in f32 (v5e-safe)
    p = jnp.exp(s)
    p = p * pl.reciprocal(jnp.sum(p, axis=-1, keepdims=True), approx=True)
    o = jax.lax.dot_general(p.astype(jnp.bfloat16), v, (((2,), (1,)), ((0,), (0,))),
                            preferred_element_type=jnp.float32)
    o_ref[0] = o.astype(o_ref.dtype)


def scaled_dot_product_attention(q, k, v, mask):
    """q/k/v: (B, H, L, Dh) f32, mask: (B, 1, Lq, Lk) int32 (0/1)."""
    B, H, Lq, Dh = q.shape
    Lk = k.shape[2]
    scale = 1.0 / math.sqrt(Dh)
    # TODO(synk): for long sequences switch to a flash-style Lk-tiled kernel
    # (running max/sum/acc in VMEM scratch) to bound the (H,Lq,Lk) score buffer.
    return pl.pallas_call(
        partial(_mha_kernel, scale=scale),
        out_shape=jax.ShapeDtypeStruct((B, H, Lq, Dh), jnp.float32),
        grid=(B,),
        in_specs=[
            pl.BlockSpec((1, H, Lq, Dh), lambda b: (b, 0, 0, 0)),
            pl.BlockSpec((1, H, Lk, Dh), lambda b: (b, 0, 0, 0)),
            pl.BlockSpec((1, H, Lk, Dh), lambda b: (b, 0, 0, 0)),
            pl.BlockSpec((1, 1, Lq, Lk), lambda b: (b, 0, 0, 0)),
        ],
        out_specs=pl.BlockSpec((1, H, Lq, Dh), lambda b: (b, 0, 0, 0)),
        compiler_params=pltpu.CompilerParams(dimension_semantics=("parallel",)),
    )(q, k, v, mask)


# ----------------------------------------------------------------------------
# Model building blocks (glue around Pallas kernels)
# ----------------------------------------------------------------------------
def _split_heads(x2d, B, L, n_head):
    D = x2d.shape[-1]
    Dh = D // n_head
    # TODO(synk): head split/merge transposes stay in XLA.
    return x2d.reshape(B, L, n_head, Dh).transpose(0, 2, 1, 3)   # (B, H, L, Dh)


def _merge_heads(x):
    B, H, L, Dh = x.shape
    return x.transpose(0, 2, 1, 3).reshape(B * L, H * Dh)


def self_attention_block(x, mask, p, norm_p, n_head):
    B, L, D = x.shape
    x2d = x.reshape(B * L, D)
    qkv = linear(x2d, p['wqkv'], p['bqkv'])                 # fused Q|K|V projection
    q2d, k2d, v2d = jnp.split(qkv, 3, axis=-1)
    q = _split_heads(q2d, B, L, n_head)
    k = _split_heads(k2d, B, L, n_head)
    v = _split_heads(v2d, B, L, n_head)
    attn = scaled_dot_product_attention(q, k, v, mask)
    # Output projection fused with residual add + LayerNorm.
    y = linear_add_ln(_merge_heads(attn), p['wo'], p['bo'], x2d,
                      norm_p['g'], norm_p['b'])
    return y.reshape(B, L, D)


def cross_attention_block(x, enc, mask, p, norm_p, n_head):
    B, Lq, D = x.shape
    Lk = enc.shape[1]
    x2d = x.reshape(B * Lq, D)
    q2d = linear(x2d, p['wq'], p['bq'])
    kv = linear(enc.reshape(B * Lk, D), p['wkv'], p['bkv'])  # fused K|V projection
    k2d, v2d = jnp.split(kv, 2, axis=-1)
    q = _split_heads(q2d, B, Lq, n_head)
    k = _split_heads(k2d, B, Lk, n_head)
    v = _split_heads(v2d, B, Lk, n_head)
    attn = scaled_dot_product_attention(q, k, v, mask)
    y = linear_add_ln(_merge_heads(attn), p['wo'], p['bo'], x2d,
                      norm_p['g'], norm_p['b'])
    return y.reshape(B, Lq, D)


def ffn_block(x, p, norm_p):
    B, L, D = x.shape
    x2d = x.reshape(B * L, D)
    y = ffn_add_ln(x2d, x2d, p, norm_p)
    return y.reshape(B, L, D)


def encoder_layer(x, mask, p, n_head):
    x = self_attention_block(x, mask, p['attn'], p['norm1'], n_head)
    x = ffn_block(x, p['ffn'], p['norm2'])
    return x


def decoder_layer(x, enc, trg_mask, src_mask, p, n_head):
    x = self_attention_block(x, trg_mask, p['self_attn'], p['norm1'], n_head)
    x = cross_attention_block(x, enc, src_mask, p['cross_attn'], p['norm2'], n_head)
    x = ffn_block(x, p['ffn'], p['norm3'])
    return x


def sinusoidal_pos_encoding(max_len, d_model):
    pos = jnp.arange(max_len, dtype=jnp.float32)[:, None]
    i = jnp.arange(0, d_model, 2, dtype=jnp.float32)[None, :]
    angle = pos / jnp.power(10000.0, i / d_model)
    pe = jnp.zeros((max_len, d_model), jnp.float32)
    pe = pe.at[:, 0::2].set(jnp.sin(angle))
    pe = pe.at[:, 1::2].set(jnp.cos(angle))
    return pe


def embed(tokens, tok_emb, pos_enc):
    # Dropout after embedding is identity at inference; gather stays in XLA.
    B, L = tokens.shape
    return tok_emb[tokens] + pos_enc[:L][None, :, :]


# ----------------------------------------------------------------------------
# Masks (faithful to the reference forward)
# ----------------------------------------------------------------------------
def make_pad_mask(q_ids, k_ids, pad_idx_q, pad_idx_k):
    B, len_q = q_ids.shape
    len_k = k_ids.shape[1]
    qm = (q_ids != pad_idx_q)[:, None, :, None]       # (B,1,Lq,1)
    qm = jnp.broadcast_to(qm, (B, 1, len_q, len_k))
    km = (k_ids != pad_idx_k)[:, None, None, :]       # (B,1,1,Lk)
    km = jnp.broadcast_to(km, (B, 1, len_q, len_k))
    return qm & km


def causal_mask(len_q, len_k):
    # Reference uses torch.triu (upper triangular) — reproduced faithfully.
    return jnp.triu(jnp.ones((len_q, len_k), dtype=bool))


# ----------------------------------------------------------------------------
# Parameter init (deterministic, synthetic). Matmul weights stored in bf16.
# ----------------------------------------------------------------------------
def _rand_w(key, d_in, d_out, scale=0.02):
    return (jax.random.normal(key, (d_in, d_out), jnp.float32) * scale)


def init_self_mha_p(key, d_model):
    kq, kk, kv, ko = jax.random.split(key, 4)
    wqkv = jnp.concatenate([_rand_w(kq, d_model, d_model),
                            _rand_w(kk, d_model, d_model),
                            _rand_w(kv, d_model, d_model)], axis=1)
    return {'wqkv': wqkv.astype(jnp.bfloat16),
            'bqkv': jnp.zeros((3 * d_model,), jnp.float32),
            'wo': _rand_w(ko, d_model, d_model).astype(jnp.bfloat16),
            'bo': jnp.zeros((d_model,), jnp.float32)}


def init_cross_mha_p(key, d_model):
    kq, kk, kv, ko = jax.random.split(key, 4)
    wkv = jnp.concatenate([_rand_w(kk, d_model, d_model),
                           _rand_w(kv, d_model, d_model)], axis=1)
    return {'wq': _rand_w(kq, d_model, d_model).astype(jnp.bfloat16),
            'bq': jnp.zeros((d_model,), jnp.float32),
            'wkv': wkv.astype(jnp.bfloat16),
            'bkv': jnp.zeros((2 * d_model,), jnp.float32),
            'wo': _rand_w(ko, d_model, d_model).astype(jnp.bfloat16),
            'bo': jnp.zeros((d_model,), jnp.float32)}


def init_norm_p(d_model):
    return {'g': jnp.ones((d_model,), jnp.float32),
            'b': jnp.zeros((d_model,), jnp.float32)}


def init_ffn_p(key, d_model, hidden):
    k1, k2 = jax.random.split(key)
    return {'w1': _rand_w(k1, d_model, hidden).astype(jnp.bfloat16),
            'b1': jnp.zeros((hidden,), jnp.float32),
            'w2': _rand_w(k2, hidden, d_model).astype(jnp.bfloat16),
            'b2': jnp.zeros((d_model,), jnp.float32)}


def init_params(key, enc_voc, dec_voc, d_model, hidden, num_layers, max_len):
    keys = jax.random.split(key, 4 + 2 * num_layers)
    p = {
        'enc_tok_emb': _rand_w(keys[0], enc_voc, d_model),
        'dec_tok_emb': _rand_w(keys[1], dec_voc, d_model),
        'pos_enc': sinusoidal_pos_encoding(max_len, d_model),
        'enc_layers': [],
        'dec_layers': [],
    }
    for i in range(num_layers):
        ka, kf = jax.random.split(keys[2 + i])
        p['enc_layers'].append({'attn': init_self_mha_p(ka, d_model),
                                'norm1': init_norm_p(d_model),
                                'ffn': init_ffn_p(kf, d_model, hidden),
                                'norm2': init_norm_p(d_model)})
    for i in range(num_layers):
        ka, kc, kf = jax.random.split(keys[2 + num_layers + i], 3)
        p['dec_layers'].append({'self_attn': init_self_mha_p(ka, d_model),
                                'norm1': init_norm_p(d_model),
                                'cross_attn': init_cross_mha_p(kc, d_model),
                                'norm2': init_norm_p(d_model),
                                'ffn': init_ffn_p(kf, d_model, hidden),
                                'norm3': init_norm_p(d_model)})
    ko = keys[2 + 2 * num_layers]
    # Pad the vocab projection to a lane-dense 128-multiple ONCE at init.
    vp = _round_up(dec_voc, 128)
    w_out = _rand_w(ko, d_model, dec_voc)
    w_out = jnp.pad(w_out, ((0, 0), (0, vp - dec_voc))).astype(jnp.bfloat16)
    p['out_proj'] = {'w': w_out, 'b': jnp.zeros((vp,), jnp.float32)}
    return p


# ----------------------------------------------------------------------------
# Full Transformer forward
# ----------------------------------------------------------------------------
def transformer_forward(params, src, trg, *, src_pad_idx, trg_pad_idx, n_head,
                        dec_voc_size):
    src_mask = make_pad_mask(src, src, src_pad_idx, src_pad_idx)
    trg_pad_mask = make_pad_mask(trg, trg, trg_pad_idx, trg_pad_idx)
    trg_mask = trg_pad_mask & causal_mask(trg.shape[1], trg.shape[1])
    # TODO(synk): for long sequences build the mask in-kernel (broadcasted_iota +
    # pad lengths) or pass int8 to cut the (B,1,Lq,Lk) DMA traffic.
    src_mask_i = src_mask.astype(jnp.int32)
    trg_mask_i = trg_mask.astype(jnp.int32)

    # Encoder
    x = embed(src, params['enc_tok_emb'], params['pos_enc'])
    for lp in params['enc_layers']:
        x = encoder_layer(x, src_mask_i, lp, n_head)
    enc = x

    # Decoder
    # TODO(synk): reference passes LayerNorm as Decoder's layer_num; we use num_layers.
    y = embed(trg, params['dec_tok_emb'], params['pos_enc'])
    for lp in params['dec_layers']:
        y = decoder_layer(y, enc, trg_mask_i, src_mask_i, lp, n_head)

    B, L, D = y.shape
    out = linear(y.reshape(B * L, D),
                 params['out_proj']['w'], params['out_proj']['b'])
    out = out[:, :dec_voc_size]                       # drop lane padding
    return out.reshape(B, L, dec_voc_size)


# ----------------------------------------------------------------------------
if __name__ == "__main__":
    # Small config consistent with the module's constructor.
    src_pad_idx = 0
    trg_pad_idx = 0
    enc_voc_size = 11
    dec_voc_size = 13
    d_model = 32
    hidden_dim = 64
    n_head = 4
    max_len = 16
    num_layers = 2
    B, L = 2, 8

    key = jax.random.PRNGKey(0)
    kp, ks, kt = jax.random.split(key, 3)
    params = init_params(kp, enc_voc_size, dec_voc_size, d_model, hidden_dim,
                         num_layers, max_len)

    src = jax.random.randint(ks, (B, L), 1, enc_voc_size, dtype=jnp.int32)
    trg = jax.random.randint(kt, (B, L), 1, dec_voc_size, dtype=jnp.int32)
    # Introduce some padding tokens so the pad masks matter.
    src = src.at[:, -2:].set(src_pad_idx)
    trg = trg.at[:, -1:].set(trg_pad_idx)

    fwd = jax.jit(partial(transformer_forward,
                          src_pad_idx=src_pad_idx,
                          trg_pad_idx=trg_pad_idx,
                          n_head=n_head,
                          dec_voc_size=dec_voc_size))
    out = fwd(params, src, trg)
    out = jax.block_until_ready(out)
    assert out.shape == (B, L, dec_voc_size)
    assert bool(jnp.all(jnp.isfinite(out)))
    print("KERNEL_OK")
</pallas_src>

<mosaic_0001>
module attributes {stable_mosaic.version = 11 : i64} {
  func.func @_linear_kernel(%arg0: i32, %arg1: i32, %arg2: i32, %arg3: memref<16x32xf32, #tpu.memory_space<vmem>>, %arg4: memref<32x96xbf16, #tpu.memory_space<vmem>>, %arg5: memref<1x96xf32, #tpu.memory_space<vmem>>, %arg6: memref<16x96xf32, #tpu.memory_space<vmem>>, %arg7: memref<16x96xf32, #tpu.memory_space<vmem>>) attributes {dimension_semantics = [#tpu.dimension_semantics<parallel>, #tpu.dimension_semantics<parallel>, #tpu.dimension_semantics<arbitrary>], iteration_bounds = array<i64: 1, 1, 1>, scalar_prefetch = 0 : i64, scratch_operands = 1 : i64, tpu.core_type = #tpu.core_type<tc>, window_params = [{transform_indices = @transform_0, window_bounds = array<i64: 16, 32>}, {transform_indices = @transform_1, window_bounds = array<i64: 32, 96>}, {transform_indices = @transform_2, window_bounds = array<i64: 1, 96>}, {transform_indices = @transform_3, window_bounds = array<i64: 16, 96>}]} {
    %c0_i32 = arith.constant 0 : i32
    %0 = arith.cmpi eq, %arg2, %c0_i32 : i32
    %1 = arith.extui %0 : i1 to i32
    %c0_i32_0 = arith.constant 0 : i32
    %2 = arith.cmpi ne, %1, %c0_i32_0 : i32
    scf.if %2 {
      %cst_10 = arith.constant 0.000000e+00 : f32
      %13 = vector.broadcast %cst_10 : f32 to vector<16x96xf32>
      %c0_11 = arith.constant 0 : index
      %c0_12 = arith.constant 0 : index
      %14 = vector.load %arg7[%c0_11, %c0_12] : memref<16x96xf32, #tpu.memory_space<vmem>>, vector<16x96xf32>
      tpu.vector_store %arg7[%c0_11, %c0_12], %13 {strides = array<i32>} : memref<16x96xf32, #tpu.memory_space<vmem>>, vector<16x96xf32>,
    } else {
    }
    %c0 = arith.constant 0 : index
    %c0_1 = arith.constant 0 : index
    %3 = vector.load %arg7[%c0, %c0_1] : memref<16x96xf32, #tpu.memory_space<vmem>>, vector<16x96xf32>
    %c0_2 = arith.constant 0 : index
    %c0_3 = arith.constant 0 : index
    %4 = vector.load %arg3[%c0_2, %c0_3] : memref<16x32xf32, #tpu.memory_space<vmem>>, vector<16x32xf32>
    %5 = arith.truncf %4 : vector<16x32xf32> to vector<16x32xbf16>
    %c0_4 = arith.constant 0 : index
    %c0_5 = arith.constant 0 : index
    %6 = vector.load %arg4[%c0_4, %c0_5] : memref<32x96xbf16, #tpu.memory_space<vmem>>, vector<32x96xbf16>
    %cst = arith.constant dense<0.000000e+00> : vector<16x96xf32>
    %7 = tpu.matmul %5, %6, %cst {dimension_numbers = #tpu.dot_dimension_numbers<[1], [0], [0], [1], [0, 0, 1, 1], [], []>} : vector<16x32xbf16>, vector<32x96xbf16>, vector<16x96xf32> -> vector<16x96xf32>
    %8 = arith.addf %3, %7 : vector<16x96xf32>
    %c0_6 = arith.constant 0 : index
    %c0_7 = arith.constant 0 : index
    %9 = vector.load %arg7[%c0_6, %c0_7] : memref<16x96xf32, #tpu.memory_space<vmem>>, vector<16x96xf32>
    tpu.vector_store %arg7[%c0_6, %c0_7], %8 {strides = array<i32>} : memref<16x96xf32, #tpu.memory_space<vmem>>, vector<16x96xf32>,
    %c0_i32_8 = arith.constant 0 : i32
    %10 = arith.cmpi eq, %arg2, %c0_i32_8 : i32
    %11 = arith.extui %10 : i1 to i32
    %c0_i32_9 = arith.constant 0 : i32
    %12 = arith.cmpi ne, %11, %c0_i32_9 : i32
    scf.if %12 {
      %c0_10 = arith.constant 0 : index
      %c0_11 = arith.constant 0 : index
      %13 = vector.load %arg7[%c0_10, %c0_11] : memref<16x96xf32, #tpu.memory_space<vmem>>, vector<16x96xf32>
      %c0_12 = arith.constant 0 : index
      %c0_13 = arith.constant 0 : index
      %14 = vector.load %arg5[%c0_12, %c0_13] : memref<1x96xf32, #tpu.memory_space<vmem>>, vector<1x96xf32>
      %15 = vector.broadcast %14 : vector<1x96xf32> to vector<16x96xf32>
      %16 = arith.addf %13, %15 : vector<16x96xf32>
      %c0_14 = arith.constant 0 : index
      %c0_15 = arith.constant 0 : index
      %17 = vector.load %arg6[%c0_14, %c0_15] : memref<16x96xf32, #tpu.memory_space<vmem>>, vector<16x96xf32>
      tpu.vector_store %arg6[%c0_14, %c0_15], %16 {strides = array<i32>} : memref<16x96xf32, #tpu.memory_space<vmem>>, vector<16x96xf32>,
    } else {
    }
    return
  }
  func.func @transform_0(%arg0: i32, %arg1: i32, %arg2: i32) -> (i32, i32) {
    %c0_i32 = arith.constant 0 : i32
    return %arg0, %arg2 : i32, i32
  }
  func.func @transform_1(%arg0: i32, %arg1: i32, %arg2: i32) -> (i32, i32) {
    %c0_i32 = arith.constant 0 : i32
    return %arg2, %arg1 : i32, i32
  }
  func.func @transform_2(%arg0: i32, %arg1: i32, %arg2: i32) -> (i32, i32) {
    %c0_i32 = arith.constant 0 : i32
    %c0_i32_0 = arith.constant 0 : i32
    return %c0_i32, %arg1 : i32, i32
  }
  func.func @transform_3(%arg0: i32, %arg1: i32, %arg2: i32) -> (i32, i32) {
    %c0_i32 = arith.constant 0 : i32
    return %arg0, %arg1 : i32, i32
  }
}

module attributes {stable_mosaic.version = 11 : i64} {
  func.func @_mha_kernel(%arg0: i32, %arg1: memref<1x4x8x8xf32, #tpu.memory_space<vmem>>, %arg2: memref<1x4x8x8xf32, #tpu.memory_space<vmem>>, %arg3: memref<1x4x8x8xf32, #tpu.memory_space<vmem>>, %arg4: memref<1x1x8x8xi32, #tpu.memory_space<vmem>>, %arg5: memref<1x4x8x8xf32, #tpu.memory_space<vmem>>) attributes {dimension_semantics = [#tpu.dimension_semantics<parallel>], iteration_bounds = array<i64: 2>, scalar_prefetch = 0 : i64, scratch_operands = 0 : i64, tpu.core_type = #tpu.core_type<tc>, window_params = [{transform_indices = @transform_0, window_bounds = array<i64: 1, 4, 8, 8>}, {transform_indices = @transform_1, window_bounds = array<i64: 1, 4, 8, 8>}, {transform_indices = @transform_2, window_bounds = array<i64: 1, 4, 8, 8>}, {transform_indices = @transform_3, window_bounds = array<i64: 1, 1, 8, 8>}, {transform_indices = @transform_4, window_bounds = array<i64: 1, 4, 8, 8>}]} {
    %c0 = arith.constant 0 : index
    %c0_0 = arith.constant 0 : index
    %c0_1 = arith.constant 0 : index
    %c0_2 = arith.constant 0 : index
    %0 = vector.load %arg1[%c0, %c0_0, %c0_1, %c0_2] : memref<1x4x8x8xf32, #tpu.memory_space<vmem>>, vector<1x4x8x8xf32>
    %1 = vector.shape_cast %0 : vector<1x4x8x8xf32> to vector<4x8x8xf32>
    %2 = arith.truncf %1 : vector<4x8x8xf32> to vector<4x8x8xbf16>
    %c0_3 = arith.constant 0 : index
    %c0_4 = arith.constant 0 : index
    %c0_5 = arith.constant 0 : index
    %c0_6 = arith.constant 0 : index
    %3 = vector.load %arg2[%c0_3, %c0_4, %c0_5, %c0_6] : memref<1x4x8x8xf32, #tpu.memory_space<vmem>>, vector<1x4x8x8xf32>
    %4 = vector.shape_cast %3 : vector<1x4x8x8xf32> to vector<4x8x8xf32>
    %5 = arith.truncf %4 : vector<4x8x8xf32> to vector<4x8x8xbf16>
    %c0_7 = arith.constant 0 : index
    %c0_8 = arith.constant 0 : index
    %c0_9 = arith.constant 0 : index
    %c0_10 = arith.constant 0 : index
    %6 = vector.load %arg3[%c0_7, %c0_8, %c0_9, %c0_10] : memref<1x4x8x8xf32, #tpu.memory_space<vmem>>, vector<1x4x8x8xf32>
    %7 = vector.shape_cast %6 : vector<1x4x8x8xf32> to vector<4x8x8xf32>
    %8 = arith.truncf %7 : vector<4x8x8xf32> to vector<4x8x8xbf16>
    %c0_11 = arith.constant 0 : index
    %c0_12 = arith.constant 0 : index
    %c0_13 = arith.constant 0 : index
    %c0_14 = arith.constant 0 : index
    %9 = vector.load %arg4[%c0_11, %c0_12, %c0_13, %c0_14] : memref<1x1x8x8xi32, #tpu.memory_space<vmem>>, vector<1x1x8x8xi32>
    %10 = vector.shape_cast %9 : vector<1x1x8x8xi32> to vector<8x8xi32>
    %cst = arith.constant dense<0.000000e+00> : vector<4x8x8xf32>
    %11 = tpu.matmul %2, %5, %cst {dimension_numbers = #tpu.dot_dimension_numbers<[2], [2], [1], [1], [0, 0, 0, 1, 1, 1], [0], [0]>} : vector<4x8x8xbf16>, vector<4x8x8xbf16>, vector<4x8x8xf32> -> vector<4x8x8xf32>
    %cst_15 = arith.constant 0.353553385 : f32
    %12 = vector.broadcast %cst_15 : f32 to vector<4x8x8xf32>
    %13 = arith.mulf %11, %12 : vector<4x8x8xf32>
    %14 = vector.shape_cast %10 : vector<8x8xi32> to vector<1x8x8xi32>
    %c0_i32 = arith.constant 0 : i32
    %15 = vector.broadcast %c0_i32 : i32 to vector<1x8x8xi32>
    %16 = arith.cmpi ne, %14, %15 : vector<1x8x8xi32>
    %cst_16 = arith.constant -1.000000e+09 : f32
    %17 = vector.shape_cast %16 : vector<1x8x8xi1> to vector<1x8x8xi1>
    %18 = vector.broadcast %17 : vector<1x8x8xi1> to vector<4x8x8xi1>
    %19 = vector.broadcast %cst_16 : f32 to vector<4x8x8xf32>
    %20 = arith.select %18, %13, %19 : vector<4x8x8xi1>, vector<4x8x8xf32>
    %cst_17 = arith.constant dense<0xFF800000> : vector<4x8xf32>
    %21 = vector.multi_reduction <maximumf>, %20, %cst_17 [2] : vector<4x8x8xf32> to vector<4x8xf32>
    %22 = vector.shape_cast %21 : vector<4x8xf32> to vector<4x8x1xf32>
    %23 = vector.broadcast %22 : vector<4x8x1xf32> to vector<4x8x8xf32>
    %24 = arith.subf %20, %23 : vector<4x8x8xf32>
    %25 = math.exp %24 : vector<4x8x8xf32>
    %cst_18 = arith.constant dense<0.000000e+00> : vector<4x8xf32>
    %26 = vector.multi_reduction <add>, %25, %cst_18 [2] : vector<4x8x8xf32> to vector<4x8xf32>
    %27 = vector.shape_cast %26 : vector<4x8xf32> to vector<4x8x1xf32>
    %28 = tpu.reciprocal %27 {approx = true} : vector<4x8x1xf32> -> vector<4x8x1xf32>
    %29 = vector.broadcast %28 : vector<4x8x1xf32> to vector<4x8x8xf32>
    %30 = arith.mulf %25, %29 : vector<4x8x8xf32>
    %31 = arith.truncf %30 : vector<4x8x8xf32> to vector<4x8x8xbf16>
    %cst_19 = arith.constant dense<0.000000e+00> : vector<4x8x8xf32>
    %32 = tpu.matmul %31, %8, %cst_19 {dimension_numbers = #tpu.dot_dimension_numbers<[2], [1], [1], [2], [0, 0, 0, 1, 1, 2], [0], [0]>} : vector<4x8x8xbf16>, vector<4x8x8xbf16>, vector<4x8x8xf32> -> vector<4x8x8xf32>
    %c0_20 = arith.constant 0 : index
    %c0_21 = arith.constant 0 : index
    %c0_22 = arith.constant 0 : index
    %c0_23 = arith.constant 0 : index
    %33 = vector.load %arg5[%c0_20, %c0_21, %c0_22, %c0_23] : memref<1x4x8x8xf32, #tpu.memory_space<vmem>>, vector<1x4x8x8xf32>
    %34 = vector.shape_cast %33 : vector<1x4x8x8xf32> to vector<4x8x8xf32>
    %35 = vector.shape_cast %32 : vector<4x8x8xf32> to vector<1x4x8x8xf32>
    tpu.vector_store %arg5[%c0_20, %c0_21, %c0_22, %c0_23], %35 {strides = array<i32>} : memref<1x4x8x8xf32, #tpu.memory_space<vmem>>, vector<1x4x8x8xf32>,
    return
  }
  func.func @transform_0(%arg0: i32) -> (i32, i32, i32, i32) {
    %c0_i32 = arith.constant 0 : i32
    %c0_i32_0 = arith.constant 0 : i32
    %c0_i32_1 = arith.constant 0 : i32
    %c0_i32_2 = arith.constant 0 : i32
    return %arg0, %c0_i32, %c0_i32_0, %c0_i32_1 : i32, i32, i32, i32
  }
  func.func @transform_1(%arg0: i32) -> (i32, i32, i32, i32) {
    %c0_i32 = arith.constant 0 : i32
    %c0_i32_0 = arith.constant 0 : i32
    %c0_i32_1 = arith.constant 0 : i32
    %c0_i32_2 = arith.constant 0 : i32
    return %arg0, %c0_i32, %c0_i32_0, %c0_i32_1 : i32, i32, i32, i32
  }
  func.func @transform_2(%arg0: i32) -> (i32, i32, i32, i32) {
    %c0_i32 = arith.constant 0 : i32
    %c0_i32_0 = arith.constant 0 : i32
    %c0_i32_1 = arith.constant 0 : i32
    %c0_i32_2 = arith.constant 0 : i32
    return %arg0, %c0_i32, %c0_i32_0, %c0_i32_1 : i32, i32, i32, i32
  }
  func.func @transform_3(%arg0: i32) -> (i32, i32, i32, i32) {
    %c0_i32 = arith.constant 0 : i32
    %c0_i32_0 = arith.constant 0 : i32
    %c0_i32_1 = arith.constant 0 : i32
    %c0_i32_2 = arith.constant 0 : i32
    return %arg0, %c0_i32, %c0_i32_0, %c0_i32_1 : i32, i32, i32, i32
  }
  func.func @transform_4(%arg0: i32) -> (i32, i32, i32, i32) {
    %c0_i32 = arith.constant 0 : i32
    %c0_i32_0 = arith.constant 0 : i32
    %c0_i32_1 = arith.constant 0 : i32
    %c0_i32_2 = arith.constant 0 : i32
    return %arg0, %c0_i32, %c0_i32_0, %c0_i32_1 : i32, i32, i32, i32
  }
}

module attributes {stable_mosaic.version = 11 : i64} {
  func.func @_linear_add_ln_kernel(%arg0: i32, %arg1: i32, %arg2: memref<16x32xf32, #tpu.memory_space<vmem>>, %arg3: memref<32x32xbf16, #tpu.memory_space<vmem>>, %arg4: memref<1x32xf32, #tpu.memory_space<vmem>>, %arg5: memref<16x32xf32, #tpu.memory_space<vmem>>, %arg6: memref<1x32xf32, #tpu.memory_space<vmem>>, %arg7: memref<1x32xf32, #tpu.memory_space<vmem>>, %arg8: memref<16x32xf32, #tpu.memory_space<vmem>>, %arg9: memref<16x32xf32, #tpu.memory_space<vmem>>) attributes {dimension_semantics = [#tpu.dimension_semantics<parallel>, #tpu.dimension_semantics<arbitrary>], iteration_bounds = array<i64: 1, 1>, scalar_prefetch = 0 : i64, scratch_operands = 1 : i64, tpu.core_type = #tpu.core_type<tc>, window_params = [{transform_indices = @transform_0, window_bounds = array<i64: 16, 32>}, {transform_indices = @transform_1, window_bounds = array<i64: 32, 32>}, {pipeline_mode = #tpu.pipeline_mode<synchronous>, transform_indices = @transform_2, window_bounds = array<i64: 1, 32>}, {transform_indices = @transform_3, window_bounds = array<i64: 16, 32>}, {pipeline_mode = #tpu.pipeline_mode<synchronous>, transform_indices = @transform_4, window_bounds = array<i64: 1, 32>}, {pipeline_mode = #tpu.pipeline_mode<synchronous>, transform_indices = @transform_5, window_bounds = array<i64: 1, 32>}, {transform_indices = @transform_6, window_bounds = array<i64: 16, 32>}]} {
    %c0_i32 = arith.constant 0 : i32
    %0 = arith.cmpi eq, %arg1, %c0_i32 : i32
    %1 = arith.extui %0 : i1 to i32
    %c0_i32_0 = arith.constant 0 : i32
    %2 = arith.cmpi ne, %1, %c0_i32_0 : i32
    scf.if %2 {
      %cst_10 = arith.constant 0.000000e+00 : f32
      %13 = vector.broadcast %cst_10 : f32 to vector<16x32xf32>
      %c0_11 = arith.constant 0 : index
      %c0_12 = arith.constant 0 : index
      %14 = vector.load %arg9[%c0_11, %c0_12] : memref<16x32xf32, #tpu.memory_space<vmem>>, vector<16x32xf32>
      tpu.vector_store %arg9[%c0_11, %c0_12], %13 {strides = array<i32>} : memref<16x32xf32, #tpu.memory_space<vmem>>, vector<16x32xf32>,
    } else {
    }
    %c0 = arith.constant 0 : index
    %c0_1 = arith.constant 0 : index
    %3 = vector.load %arg9[%c0, %c0_1] : memref<16x32xf32, #tpu.memory_space<vmem>>, vector<16x32xf32>
    %c0_2 = arith.constant 0 : index
    %c0_3 = arith.constant 0 : index
    %4 = vector.load %arg2[%c0_2, %c0_3] : memref<16x32xf32, #tpu.memory_space<vmem>>, vector<16x32xf32>
    %5 = arith.truncf %4 : vector<16x32xf32> to vector<16x32xbf16>
    %c0_4 = arith.constant 0 : index
    %c0_5 = arith.constant 0 : index
    %6 = vector.load %arg3[%c0_4, %c0_5] : memref<32x32xbf16, #tpu.memory_space<vmem>>, vector<32x32xbf16>
    %cst = arith.constant dense<0.000000e+00> : vector<16x32xf32>
    %7 = tpu.matmul %5, %6, %cst {dimension_numbers = #tpu.dot_dimension_numbers<[1], [0], [0], [1], [0, 0, 1, 1], [], []>} : vector<16x32xbf16>, vector<32x32xbf16>, vector<16x32xf32> -> vector<16x32xf32>
    %8 = arith.addf %3, %7 : vector<16x32xf32>
    %c0_6 = arith.constant 0 : index
    %c0_7 = arith.constant 0 : index
    %9 = vector.load %arg9[%c0_6, %c0_7] : memref<16x32xf32, #tpu.memory_space<vmem>>, vector<16x32xf32>
    tpu.vector_store %arg9[%c0_6, %c0_7], %8 {strides = array<i32>} : memref<16x32xf32, #tpu.memory_space<vmem>>, vector<16x32xf32>,
    %c0_i32_8 = arith.constant 0 : i32
    %10 = arith.cmpi eq, %arg1, %c0_i32_8 : i32
    %11 = arith.extui %10 : i1 to i32
    %c0_i32_9 = arith.constant 0 : i32
    %12 = arith.cmpi ne, %11, %c0_i32_9 : i32
    scf.if %12 {
      %c0_10 = arith.constant 0 : index
      %c0_11 = arith.constant 0 : index
      %13 = vector.load %arg9[%c0_10, %c0_11] : memref<16x32xf32, #tpu.memory_space<vmem>>, vector<16x32xf32>
      %c0_12 = arith.constant 0 : index
      %c0_13 = arith.constant 0 : index
      %14 = vector.load %arg4[%c0_12, %c0_13] : memref<1x32xf32, #tpu.memory_space<vmem>>, vector<1x32xf32>
      %15 = vector.broadcast %14 : vector<1x32xf32> to vector<16x32xf32>
      %16 = arith.addf %13, %15 : vector<16x32xf32>
      %c0_14 = arith.constant 0 : index
      %c0_15 = arith.constant 0 : index
      %17 = vector.load %arg5[%c0_14, %c0_15] : memref<16x32xf32, #tpu.memory_space<vmem>>, vector<16x32xf32>
      %18 = arith.addf %16, %17 : vector<16x32xf32>
      %cst_16 = arith.constant dense<0.000000e+00> : vector<16xf32>
      %19 = vector.multi_reduction <add>, %18, %cst_16 [1] : vector<16x32xf32> to vector<16xf32>
      %20 = vector.shape_cast %19 : vector<16xf32> to vector<16x1xf32>
      %cst_17 = arith.constant 3.200000e+01 : f32
      %21 = vector.broadcast %cst_17 : f32 to vector<16x1xf32>
      %22 = arith.divf %20, %21 : vector<16x1xf32>
      %23 = vector.broadcast %22 : vector<16x1xf32> to vector<16x32xf32>
      %24 = arith.subf %18, %23 : vector<16x32xf32>
      %25 = arith.mulf %24, %24 : vector<16x32xf32>
      %cst_18 = arith.constant dense<0.000000e+00> : vector<16xf32>
      %26 = vector.multi_reduction <add>, %25, %cst_18 [1] : vector<16x32xf32> to vector<16xf32>
      %27 = vector.shape_cast %26 : vector<16xf32> to vector<16x1xf32>
      %cst_19 = arith.constant 3.200000e+01 : f32
      %28 = vector.broadcast %cst_19 : f32 to vector<16x1xf32>
      %29 = arith.divf %27, %28 : vector<16x1xf32>
      %30 = vector.broadcast %22 : vector<16x1xf32> to vector<16x32xf32>
      %31 = arith.subf %18, %30 : vector<16x32xf32>
      %cst_20 = arith.constant 9.99999996E-13 : f32
      %32 = vector.broadcast %cst_20 : f32 to vector<16x1xf32>
      %33 = arith.addf %29, %32 : vector<16x1xf32>
      %34 = math.rsqrt %33 : vector<16x1xf32>
      %35 = vector.broadcast %34 : vector<16x1xf32> to vector<16x32xf32>
      %36 = arith.mulf %31, %35 : vector<16x32xf32>
      %c0_21 = arith.constant 0 : index
      %c0_22 = arith.constant 0 : index
      %37 = vector.load %arg6[%c0_21, %c0_22] : memref<1x32xf32, #tpu.memory_space<vmem>>, vector<1x32xf32>
      %38 = vector.broadcast %37 : vector<1x32xf32> to vector<16x32xf32>
      %39 = arith.mulf %36, %38 : vector<16x32xf32>
      %c0_23 = arith.constant 0 : index
      %c0_24 = arith.constant 0 : index
      %40 = vector.load %arg7[%c0_23, %c0_24] : memref<1x32xf32, #tpu.memory_space<vmem>>, vector<1x32xf32>
      %41 = vector.broadcast %40 : vector<1x32xf32> to vector<16x32xf32>
      %42 = arith.addf %39, %41 : vector<16x32xf32>
      %c0_25 = arith.constant 0 : index
      %c0_26 = arith.constant 0 : index
      %43 = vector.load %arg8[%c0_25, %c0_26] : memref<16x32xf32, #tpu.memory_space<vmem>>, vector<16x32xf32>
      tpu.vector_store %arg8[%c0_25, %c0_26], %42 {strides = array<i32>} : memref<16x32xf32, #tpu.memory_space<vmem>>, vector<16x32xf32>,
    } else {
    }
    return
  }
  func.func @transform_0(%arg0: i32, %arg1: i32) -> (i32, i32) {
    %c0_i32 = arith.constant 0 : i32
    return %arg0, %arg1 : i32, i32
  }
  func.func @transform_1(%arg0: i32, %arg1: i32) -> (i32, i32) {
    %c0_i32 = arith.constant 0 : i32
    %c0_i32_0 = arith.constant 0 : i32
    return %arg1, %c0_i32 : i32, i32
  }
  func.func @transform_2(%arg0: i32, %arg1: i32) -> (i32, i32) {
    %c0_i32 = arith.constant 0 : i32
    %c0_i32_0 = arith.constant 0 : i32
    %c0_i32_1 = arith.constant 0 : i32
    return %c0_i32, %c0_i32_0 : i32, i32
  }
  func.func @transform_3(%arg0: i32, %arg1: i32) -> (i32, i32) {
    %c0_i32 = arith.constant 0 : i32
    %c0_i32_0 = arith.constant 0 : i32
    return %arg0, %c0_i32 : i32, i32
  }
  func.func @transform_4(%arg0: i32, %arg1: i32) -> (i32, i32) {
    %c0_i32 = arith.constant 0 : i32
    %c0_i32_0 = arith.constant 0 : i32
    %c0_i32_1 = arith.constant 0 : i32
    return %c0_i32, %c0_i32_0 : i32, i32
  }
  func.func @transform_5(%arg0: i32, %arg1: i32) -> (i32, i32) {
    %c0_i32 = arith.constant 0 : i32
    %c0_i32_0 = arith.constant 0 : i32
    %c0_i32_1 = arith.constant 0 : i32
    return %c0_i32, %c0_i32_0 : i32, i32
  }
  func.func @transform_6(%arg0: i32, %arg1: i32) -> (i32, i32) {
    %c0_i32 = arith.constant 0 : i32
    %c0_i32_0 = arith.constant 0 : i32
    return %arg0, %c0_i32 : i32, i32
  }
}

module attributes {stable_mosaic.version = 11 : i64} {
  func.func @_linear_kernel(%arg0: i32, %arg1: i32, %arg2: i32, %arg3: memref<16x32xf32, #tpu.memory_space<vmem>>, %arg4: memref<32x32xbf16, #tpu.memory_space<vmem>>, %arg5: memref<1x32xf32, #tpu.memory_space<vmem>>, %arg6: memref<16x32xf32, #tpu.memory_space<vmem>>, %arg7: memref<16x32xf32, #tpu.memory_space<vmem>>) attributes {dimension_semantics = [#tpu.dimension_semantics<parallel>, #tpu.dimension_semantics<parallel>, #tpu.dimension_semantics<arbitrary>], iteration_bounds = array<i64: 1, 1, 1>, scalar_prefetch = 0 : i64, scratch_operands = 1 : i64, tpu.core_type = #tpu.core_type<tc>, window_params = [{transform_indices = @transform_0, window_bounds = array<i64: 16, 32>}, {transform_indices = @transform_1, window_bounds = array<i64: 32, 32>}, {transform_indices = @transform_2, window_bounds = array<i64: 1, 32>}, {transform_indices = @transform_3, window_bounds = array<i64: 16, 32>}]} {
    %c0_i32 = arith.constant 0 : i32
    %0 = arith.cmpi eq, %arg2, %c0_i32 : i32
    %1 = arith.extui %0 : i1 to i32
    %c0_i32_0 = arith.constant 0 : i32
    %2 = arith.cmpi ne, %1, %c0_i32_0 : i32
    scf.if %2 {
      %cst_10 = arith.constant 0.000000e+00 : f32
      %13 = vector.broadcast %cst_10 : f32 to vector<16x32xf32>
      %c0_11 = arith.constant 0 : index
      %c0_12 = arith.constant 0 : index
      %14 = vector.load %arg7[%c0_11, %c0_12] : memref<16x32xf32, #tpu.memory_space<vmem>>, vector<16x32xf32>
      tpu.vector_store %arg7[%c0_11, %c0_12], %13 {strides = array<i32>} : memref<16x32xf32, #tpu.memory_space<vmem>>, vector<16x32xf32>,
    } else {
    }
    %c0 = arith.constant 0 : index
    %c0_1 = arith.constant 0 : index
    %3 = vector.load %arg7[%c0, %c0_1] : memref<16x32xf32, #tpu.memory_space<vmem>>, vector<16x32xf32>
    %c0_2 = arith.constant 0 : index
    %c0_3 = arith.constant 0 : index
    %4 = vector.load %arg3[%c0_2, %c0_3] : memref<16x32xf32, #tpu.memory_space<vmem>>, vector<16x32xf32>
    %5 = arith.truncf %4 : vector<16x32xf32> to vector<16x32xbf16>
    %c0_4 = arith.constant 0 : index
    %c0_5 = arith.constant 0 : index
    %6 = vector.load %arg4[%c0_4, %c0_5] : memref<32x32xbf16, #tpu.memory_space<vmem>>, vector<32x32xbf16>
    %cst = arith.constant dense<0.000000e+00> : vector<16x32xf32>
    %7 = tpu.matmul %5, %6, %cst {dimension_numbers = #tpu.dot_dimension_numbers<[1], [0], [0], [1], [0, 0, 1, 1], [], []>} : vector<16x32xbf16>, vector<32x32xbf16>, vector<16x32xf32> -> vector<16x32xf32>
    %8 = arith.addf %3, %7 : vector<16x32xf32>
    %c0_6 = arith.constant 0 : index
    %c0_7 = arith.constant 0 : index
    %9 = vector.load %arg7[%c0_6, %c0_7] : memref<16x32xf32, #tpu.memory_space<vmem>>, vector<16x32xf32>
    tpu.vector_store %arg7[%c0_6, %c0_7], %8 {strides = array<i32>} : memref<16x32xf32, #tpu.memory_space<vmem>>, vector<16x32xf32>,
    %c0_i32_8 = arith.constant 0 : i32
    %10 = arith.cmpi eq, %arg2, %c0_i32_8 : i32
    %11 = arith.extui %10 : i1 to i32
    %c0_i32_9 = arith.constant 0 : i32
    %12 = arith.cmpi ne, %11, %c0_i32_9 : i32
    scf.if %12 {
      %c0_10 = arith.constant 0 : index
      %c0_11 = arith.constant 0 : index
      %13 = vector.load %arg7[%c0_10, %c0_11] : memref<16x32xf32, #tpu.memory_space<vmem>>, vector<16x32xf32>
      %c0_12 = arith.constant 0 : index
      %c0_13 = arith.constant 0 : index
      %14 = vector.load %arg5[%c0_12, %c0_13] : memref<1x32xf32, #tpu.memory_space<vmem>>, vector<1x32xf32>
      %15 = vector.broadcast %14 : vector<1x32xf32> to vector<16x32xf32>
      %16 = arith.addf %13, %15 : vector<16x32xf32>
      %c0_14 = arith.constant 0 : index
      %c0_15 = arith.constant 0 : index
      %17 = vector.load %arg6[%c0_14, %c0_15] : memref<16x32xf32, #tpu.memory_space<vmem>>, vector<16x32xf32>
      tpu.vector_store %arg6[%c0_14, %c0_15], %16 {strides = array<i32>} : memref<16x32xf32, #tpu.memory_space<vmem>>, vector<16x32xf32>,
    } else {
    }
    return
  }
  func.func @transform_0(%arg0: i32, %arg1: i32, %arg2: i32) -> (i32, i32) {
    %c0_i32 = arith.constant 0 : i32
    return %arg0, %arg2 : i32, i32
  }
  func.func @transform_1(%arg0: i32, %arg1: i32, %arg2: i32) -> (i32, i32) {
    %c0_i32 = arith.constant 0 : i32
    return %arg2, %arg1 : i32, i32
  }
  func.func @transform_2(%arg0: i32, %arg1: i32, %arg2: i32) -> (i32, i32) {
    %c0_i32 = arith.constant 0 : i32
    %c0_i32_0 = arith.constant 0 : i32
    return %c0_i32, %arg1 : i32, i32
  }
  func.func @transform_3(%arg0: i32, %arg1: i32, %arg2: i32) -> (i32, i32) {
    %c0_i32 = arith.constant 0 : i32
    return %arg0, %arg1 : i32, i32
  }
}

module attributes {stable_mosaic.version = 11 : i64} {
  func.func @_linear_kernel(%arg0: i32, %arg1: i32, %arg2: i32, %arg3: memref<16x32xf32, #tpu.memory_space<vmem>>, %arg4: memref<32x64xbf16, #tpu.memory_space<vmem>>, %arg5: memref<1x64xf32, #tpu.memory_space<vmem>>, %arg6: memref<16x64xf32, #tpu.memory_space<vmem>>, %arg7: memref<16x64xf32, #tpu.memory_space<vmem>>) attributes {dimension_semantics = [#tpu.dimension_semantics<parallel>, #tpu.dimension_semantics<parallel>, #tpu.dimension_semantics<arbitrary>], iteration_bounds = array<i64: 1, 1, 1>, scalar_prefetch = 0 : i64, scratch_operands = 1 : i64, tpu.core_type = #tpu.core_type<tc>, window_params = [{transform_indices = @transform_0, window_bounds = array<i64: 16, 32>}, {transform_indices = @transform_1, window_bounds = array<i64: 32, 64>}, {transform_indices = @transform_2, window_bounds = array<i64: 1, 64>}, {transform_indices = @transform_3, window_bounds = array<i64: 16, 64>}]} {
    %c0_i32 = arith.constant 0 : i32
    %0 = arith.cmpi eq, %arg2, %c0_i32 : i32
    %1 = arith.extui %0 : i1 to i32
    %c0_i32_0 = arith.constant 0 : i32
    %2 = arith.cmpi ne, %1, %c0_i32_0 : i32
    scf.if %2 {
      %cst_10 = arith.constant 0.000000e+00 : f32
      %13 = vector.broadcast %cst_10 : f32 to vector<16x64xf32>
      %c0_11 = arith.constant 0 : index
      %c0_12 = arith.constant 0 : index
      %14 = vector.load %arg7[%c0_11, %c0_12] : memref<16x64xf32, #tpu.memory_space<vmem>>, vector<16x64xf32>
      tpu.vector_store %arg7[%c0_11, %c0_12], %13 {strides = array<i32>} : memref<16x64xf32, #tpu.memory_space<vmem>>, vector<16x64xf32>,
    } else {
    }
    %c0 = arith.constant 0 : index
    %c0_1 = arith.constant 0 : index
    %3 = vector.load %arg7[%c0, %c0_1] : memref<16x64xf32, #tpu.memory_space<vmem>>, vector<16x64xf32>
    %c0_2 = arith.constant 0 : index
    %c0_3 = arith.constant 0 : index
    %4 = vector.load %arg3[%c0_2, %c0_3] : memref<16x32xf32, #tpu.memory_space<vmem>>, vector<16x32xf32>
    %5 = arith.truncf %4 : vector<16x32xf32> to vector<16x32xbf16>
    %c0_4 = arith.constant 0 : index
    %c0_5 = arith.constant 0 : index
    %6 = vector.load %arg4[%c0_4, %c0_5] : memref<32x64xbf16, #tpu.memory_space<vmem>>, vector<32x64xbf16>
    %cst = arith.constant dense<0.000000e+00> : vector<16x64xf32>
    %7 = tpu.matmul %5, %6, %cst {dimension_numbers = #tpu.dot_dimension_numbers<[1], [0], [0], [1], [0, 0, 1, 1], [], []>} : vector<16x32xbf16>, vector<32x64xbf16>, vector<16x64xf32> -> vector<16x64xf32>
    %8 = arith.addf %3, %7 : vector<16x64xf32>
    %c0_6 = arith.constant 0 : index
    %c0_7 = arith.constant 0 : index
    %9 = vector.load %arg7[%c0_6, %c0_7] : memref<16x64xf32, #tpu.memory_space<vmem>>, vector<16x64xf32>
    tpu.vector_store %arg7[%c0_6, %c0_7], %8 {strides = array<i32>} : memref<16x64xf32, #tpu.memory_space<vmem>>, vector<16x64xf32>,
    %c0_i32_8 = arith.constant 0 : i32
    %10 = arith.cmpi eq, %arg2, %c0_i32_8 : i32
    %11 = arith.extui %10 : i1 to i32
    %c0_i32_9 = arith.constant 0 : i32
    %12 = arith.cmpi ne, %11, %c0_i32_9 : i32
    scf.if %12 {
      %c0_10 = arith.constant 0 : index
      %c0_11 = arith.constant 0 : index
      %13 = vector.load %arg7[%c0_10, %c0_11] : memref<16x64xf32, #tpu.memory_space<vmem>>, vector<16x64xf32>
      %c0_12 = arith.constant 0 : index
      %c0_13 = arith.constant 0 : index
      %14 = vector.load %arg5[%c0_12, %c0_13] : memref<1x64xf32, #tpu.memory_space<vmem>>, vector<1x64xf32>
      %15 = vector.broadcast %14 : vector<1x64xf32> to vector<16x64xf32>
      %16 = arith.addf %13, %15 : vector<16x64xf32>
      %c0_14 = arith.constant 0 : index
      %c0_15 = arith.constant 0 : index
      %17 = vector.load %arg6[%c0_14, %c0_15] : memref<16x64xf32, #tpu.memory_space<vmem>>, vector<16x64xf32>
      tpu.vector_store %arg6[%c0_14, %c0_15], %16 {strides = array<i32>} : memref<16x64xf32, #tpu.memory_space<vmem>>, vector<16x64xf32>,
    } else {
    }
    return
  }
  func.func @transform_0(%arg0: i32, %arg1: i32, %arg2: i32) -> (i32, i32) {
    %c0_i32 = arith.constant 0 : i32
    return %arg0, %arg2 : i32, i32
  }
  func.func @transform_1(%arg0: i32, %arg1: i32, %arg2: i32) -> (i32, i32) {
    %c0_i32 = arith.constant 0 : i32
    return %arg2, %arg1 : i32, i32
  }
  func.func @transform_2(%arg0: i32, %arg1: i32, %arg2: i32) -> (i32, i32) {
    %c0_i32 = arith.constant 0 : i32
    %c0_i32_0 = arith.constant 0 : i32
    return %c0_i32, %arg1 : i32, i32
  }
  func.func @transform_3(%arg0: i32, %arg1: i32, %arg2: i32) -> (i32, i32) {
    %c0_i32 = arith.constant 0 : i32
    return %arg0, %arg1 : i32, i32
  }
}

module attributes {stable_mosaic.version = 11 : i64} {
  func.func @_linear_kernel(%arg0: i32, %arg1: i32, %arg2: i32, %arg3: memref<16x32xf32, #tpu.memory_space<vmem>>, %arg4: memref<32x128xbf16, #tpu.memory_space<vmem>>, %arg5: memref<1x128xf32, #tpu.memory_space<vmem>>, %arg6: memref<16x128xf32, #tpu.memory_space<vmem>>, %arg7: memref<16x128xf32, #tpu.memory_space<vmem>>) attributes {dimension_semantics = [#tpu.dimension_semantics<parallel>, #tpu.dimension_semantics<parallel>, #tpu.dimension_semantics<arbitrary>], iteration_bounds = array<i64: 1, 1, 1>, scalar_prefetch = 0 : i64, scratch_operands = 1 : i64, tpu.core_type = #tpu.core_type<tc>, window_params = [{transform_indices = @transform_0, window_bounds = array<i64: 16, 32>}, {transform_indices = @transform_1, window_bounds = array<i64: 32, 128>}, {transform_indices = @transform_2, window_bounds = array<i64: 1, 128>}, {transform_indices = @transform_3, window_bounds = array<i64: 16, 128>}]} {
    %c0_i32 = arith.constant 0 : i32
    %0 = arith.cmpi eq, %arg2, %c0_i32 : i32
    %1 = arith.extui %0 : i1 to i32
    %c0_i32_0 = arith.constant 0 : i32
    %2 = arith.cmpi ne, %1, %c0_i32_0 : i32
    scf.if %2 {
      %cst_10 = arith.constant 0.000000e+00 : f32
      %13 = vector.broadcast %cst_10 : f32 to vector<16x128xf32>
      %c0_11 = arith.constant 0 : index
      %c0_12 = arith.constant 0 : index
      %14 = vector.load %arg7[%c0_11, %c0_12] : memref<16x128xf32, #tpu.memory_space<vmem>>, vector<16x128xf32>
      tpu.vector_store %arg7[%c0_11, %c0_12], %13 {strides = array<i32>} : memref<16x128xf32, #tpu.memory_space<vmem>>, vector<16x128xf32>,
    } else {
    }
    %c0 = arith.constant 0 : index
    %c0_1 = arith.constant 0 : index
    %3 = vector.load %arg7[%c0, %c0_1] : memref<16x128xf32, #tpu.memory_space<vmem>>, vector<16x128xf32>
    %c0_2 = arith.constant 0 : index
    %c0_3 = arith.constant 0 : index
    %4 = vector.load %arg3[%c0_2, %c0_3] : memref<16x32xf32, #tpu.memory_space<vmem>>, vector<16x32xf32>
    %5 = arith.truncf %4 : vector<16x32xf32> to vector<16x32xbf16>
    %c0_4 = arith.constant 0 : index
    %c0_5 = arith.constant 0 : index
    %6 = vector.load %arg4[%c0_4, %c0_5] : memref<32x128xbf16, #tpu.memory_space<vmem>>, vector<32x128xbf16>
    %cst = arith.constant dense<0.000000e+00> : vector<16x128xf32>
    %7 = tpu.matmul %5, %6, %cst {dimension_numbers = #tpu.dot_dimension_numbers<[1], [0], [0], [1], [0, 0, 1, 1], [], []>} : vector<16x32xbf16>, vector<32x128xbf16>, vector<16x128xf32> -> vector<16x128xf32>
    %8 = arith.addf %3, %7 : vector<16x128xf32>
    %c0_6 = arith.constant 0 : index
    %c0_7 = arith.constant 0 : index
    %9 = vector.load %arg7[%c0_6, %c0_7] : memref<16x128xf32, #tpu.memory_space<vmem>>, vector<16x128xf32>
    tpu.vector_store %arg7[%c0_6, %c0_7], %8 {strides = array<i32>} : memref<16x128xf32, #tpu.memory_space<vmem>>, vector<16x128xf32>,
    %c0_i32_8 = arith.constant 0 : i32
    %10 = arith.cmpi eq, %arg2, %c0_i32_8 : i32
    %11 = arith.extui %10 : i1 to i32
    %c0_i32_9 = arith.constant 0 : i32
    %12 = arith.cmpi ne, %11, %c0_i32_9 : i32
    scf.if %12 {
      %c0_10 = arith.constant 0 : index
      %c0_11 = arith.constant 0 : index
      %13 = vector.load %arg7[%c0_10, %c0_11] : memref<16x128xf32, #tpu.memory_space<vmem>>, vector<16x128xf32>
      %c0_12 = arith.constant 0 : index
      %c0_13 = arith.constant 0 : index
      %14 = vector.load %arg5[%c0_12, %c0_13] : memref<1x128xf32, #tpu.memory_space<vmem>>, vector<1x128xf32>
      %15 = vector.broadcast %14 : vector<1x128xf32> to vector<16x128xf32>
      %16 = arith.addf %13, %15 : vector<16x128xf32>
      %c0_14 = arith.constant 0 : index
      %c0_15 = arith.constant 0 : index
      %17 = vector.load %arg6[%c0_14, %c0_15] : memref<16x128xf32, #tpu.memory_space<vmem>>, vector<16x128xf32>
      tpu.vector_store %arg6[%c0_14, %c0_15], %16 {strides = array<i32>} : memref<16x128xf32, #tpu.memory_space<vmem>>, vector<16x128xf32>,
    } else {
    }
    return
  }
  func.func @transform_0(%arg0: i32, %arg1: i32, %arg2: i32) -> (i32, i32) {
    %c0_i32 = arith.constant 0 : i32
    return %arg0, %arg2 : i32, i32
  }
  func.func @transform_1(%arg0: i32, %arg1: i32, %arg2: i32) -> (i32, i32) {
    %c0_i32 = arith.constant 0 : i32
    return %arg2, %arg1 : i32, i32
  }
  func.func @transform_2(%arg0: i32, %arg1: i32, %arg2: i32) -> (i32, i32) {
    %c0_i32 = arith.constant 0 : i32
    %c0_i32_0 = arith.constant 0 : i32
    return %c0_i32, %arg1 : i32, i32
  }
  func.func @transform_3(%arg0: i32, %arg1: i32, %arg2: i32) -> (i32, i32) {
    %c0_i32 = arith.constant 0 : i32
    return %arg0, %arg1 : i32, i32
  }
}

module attributes {stable_mosaic.version = 11 : i64} {
  func.func @_ffn_add_ln_kernel(%arg0: i32, %arg1: i32, %arg2: memref<16x32xf32, #tpu.memory_space<vmem>>, %arg3: memref<32x64xbf16, #tpu.memory_space<vmem>>, %arg4: memref<1x64xf32, #tpu.memory_space<vmem>>, %arg5: memref<64x32xbf16, #tpu.memory_space<vmem>>, %arg6: memref<1x32xf32, #tpu.memory_space<vmem>>, %arg7: memref<16x32xf32, #tpu.memory_space<vmem>>, %arg8: memref<1x32xf32, #tpu.memory_space<vmem>>, %arg9: memref<1x32xf32, #tpu.memory_space<vmem>>, %arg10: memref<16x32xf32, #tpu.memory_space<vmem>>, %arg11: memref<16x32xf32, #tpu.memory_space<vmem>>) attributes {dimension_semantics = [#tpu.dimension_semantics<parallel>, #tpu.dimension_semantics<arbitrary>], iteration_bounds = array<i64: 1, 1>, scalar_prefetch = 0 : i64, scratch_operands = 1 : i64, tpu.core_type = #tpu.core_type<tc>, window_params = [{transform_indices = @transform_0, window_bounds = array<i64: 16, 32>}, {transform_indices = @transform_1, window_bounds = array<i64: 32, 64>}, {transform_indices = @transform_2, window_bounds = array<i64: 1, 64>}, {transform_indices = @transform_3, window_bounds = array<i64: 64, 32>}, {pipeline_mode = #tpu.pipeline_mode<synchronous>, transform_indices = @transform_4, window_bounds = array<i64: 1, 32>}, {transform_indices = @transform_5, window_bounds = array<i64: 16, 32>}, {pipeline_mode = #tpu.pipeline_mode<synchronous>, transform_indices = @transform_6, window_bounds = array<i64: 1, 32>}, {pipeline_mode = #tpu.pipeline_mode<synchronous>, transform_indices = @transform_7, window_bounds = array<i64: 1, 32>}, {transform_indices = @transform_8, window_bounds = array<i64: 16, 32>}]} {
    %c0_i32 = arith.constant 0 : i32
    %0 = arith.cmpi eq, %arg1, %c0_i32 : i32
    %1 = arith.extui %0 : i1 to i32
    %c0_i32_0 = arith.constant 0 : i32
    %2 = arith.cmpi ne, %1, %c0_i32_0 : i32
    scf.if %2 {
      %cst_16 = arith.constant 0.000000e+00 : f32
      %21 = vector.broadcast %cst_16 : f32 to vector<16x32xf32>
      %c0_17 = arith.constant 0 : index
      %c0_18 = arith.constant 0 : index
      %22 = vector.load %arg11[%c0_17, %c0_18] : memref<16x32xf32, #tpu.memory_space<vmem>>, vector<16x32xf32>
      tpu.vector_store %arg11[%c0_17, %c0_18], %21 {strides = array<i32>} : memref<16x32xf32, #tpu.memory_space<vmem>>, vector<16x32xf32>,
    } else {
    }
    %c0 = arith.constant 0 : index
    %c0_1 = arith.constant 0 : index
    %3 = vector.load %arg2[%c0, %c0_1] : memref<16x32xf32, #tpu.memory_space<vmem>>, vector<16x32xf32>
    %4 = arith.truncf %3 : vector<16x32xf32> to vector<16x32xbf16>
    %c0_2 = arith.constant 0 : index
    %c0_3 = arith.constant 0 : index
    %5 = vector.load %arg3[%c0_2, %c0_3] : memref<32x64xbf16, #tpu.memory_space<vmem>>, vector<32x64xbf16>
    %cst = arith.constant dense<0.000000e+00> : vector<16x64xf32>
    %6 = tpu.matmul %4, %5, %cst {dimension_numbers = #tpu.dot_dimension_numbers<[1], [0], [0], [1], [0, 0, 1, 1], [], []>} : vector<16x32xbf16>, vector<32x64xbf16>, vector<16x64xf32> -> vector<16x64xf32>
    %c0_4 = arith.constant 0 : index
    %c0_5 = arith.constant 0 : index
    %7 = vector.load %arg4[%c0_4, %c0_5] : memref<1x64xf32, #tpu.memory_space<vmem>>, vector<1x64xf32>
    %8 = vector.broadcast %7 : vector<1x64xf32> to vector<16x64xf32>
    %9 = arith.addf %6, %8 : vector<16x64xf32>
    %cst_6 = arith.constant 0.000000e+00 : f32
    %10 = vector.broadcast %cst_6 : f32 to vector<16x64xf32>
    %11 = arith.maximumf %9, %10 : vector<16x64xf32>
    %c0_7 = arith.constant 0 : index
    %c0_8 = arith.constant 0 : index
    %12 = vector.load %arg11[%c0_7, %c0_8] : memref<16x32xf32, #tpu.memory_space<vmem>>, vector<16x32xf32>
    %13 = arith.truncf %11 : vector<16x64xf32> to vector<16x64xbf16>
    %c0_9 = arith.constant 0 : index
    %c0_10 = arith.constant 0 : index
    %14 = vector.load %arg5[%c0_9, %c0_10] : memref<64x32xbf16, #tpu.memory_space<vmem>>, vector<64x32xbf16>
    %cst_11 = arith.constant dense<0.000000e+00> : vector<16x32xf32>
    %15 = tpu.matmul %13, %14, %cst_11 {dimension_numbers = #tpu.dot_dimension_numbers<[1], [0], [0], [1], [0, 0, 1, 1], [], []>} : vector<16x64xbf16>, vector<64x32xbf16>, vector<16x32xf32> -> vector<16x32xf32>
    %16 = arith.addf %12, %15 : vector<16x32xf32>
    %c0_12 = arith.constant 0 : index
    %c0_13 = arith.constant 0 : index
    %17 = vector.load %arg11[%c0_12, %c0_13] : memref<16x32xf32, #tpu.memory_space<vmem>>, vector<16x32xf32>
    tpu.vector_store %arg11[%c0_12, %c0_13], %16 {strides = array<i32>} : memref<16x32xf32, #tpu.memory_space<vmem>>, vector<16x32xf32>,
    %c0_i32_14 = arith.constant 0 : i32
    %18 = arith.cmpi eq, %arg1, %c0_i32_14 : i32
    %19 = arith.extui %18 : i1 to i32
    %c0_i32_15 = arith.constant 0 : i32
    %20 = arith.cmpi ne, %19, %c0_i32_15 : i32
    scf.if %20 {
      %c0_16 = arith.constant 0 : index
      %c0_17 = arith.constant 0 : index
      %21 = vector.load %arg11[%c0_16, %c0_17] : memref<16x32xf32, #tpu.memory_space<vmem>>, vector<16x32xf32>
      %c0_18 = arith.constant 0 : index
      %c0_19 = arith.constant 0 : index
      %22 = vector.load %arg6[%c0_18, %c0_19] : memref<1x32xf32, #tpu.memory_space<vmem>>, vector<1x32xf32>
      %23 = vector.broadcast %22 : vector<1x32xf32> to vector<16x32xf32>
      %24 = arith.addf %21, %23 : vector<16x32xf32>
      %c0_20 = arith.constant 0 : index
      %c0_21 = arith.constant 0 : index
      %25 = vector.load %arg7[%c0_20, %c0_21] : memref<16x32xf32, #tpu.memory_space<vmem>>, vector<16x32xf32>
      %26 = arith.addf %24, %25 : vector<16x32xf32>
      %cst_22 = arith.constant dense<0.000000e+00> : vector<16xf32>
      %27 = vector.multi_reduction <add>, %26, %cst_22 [1] : vector<16x32xf32> to vector<16xf32>
      %28 = vector.shape_cast %27 : vector<16xf32> to vector<16x1xf32>
      %cst_23 = arith.constant 3.200000e+01 : f32
      %29 = vector.broadcast %cst_23 : f32 to vector<16x1xf32>
      %30 = arith.divf %28, %29 : vector<16x1xf32>
      %31 = vector.broadcast %30 : vector<16x1xf32> to vector<16x32xf32>
      %32 = arith.subf %26, %31 : vector<16x32xf32>
      %33 = arith.mulf %32, %32 : vector<16x32xf32>
      %cst_24 = arith.constant dense<0.000000e+00> : vector<16xf32>
      %34 = vector.multi_reduction <add>, %33, %cst_24 [1] : vector<16x32xf32> to vector<16xf32>
      %35 = vector.shape_cast %34 : vector<16xf32> to vector<16x1xf32>
      %cst_25 = arith.constant 3.200000e+01 : f32
      %36 = vector.broadcast %cst_25 : f32 to vector<16x1xf32>
      %37 = arith.divf %35, %36 : vector<16x1xf32>
      %38 = vector.broadcast %30 : vector<16x1xf32> to vector<16x32xf32>
      %39 = arith.subf %26, %38 : vector<16x32xf32>
      %cst_26 = arith.constant 9.99999996E-13 : f32
      %40 = vector.broadcast %cst_26 : f32 to vector<16x1xf32>
      %41 = arith.addf %37, %40 : vector<16x1xf32>
      %42 = math.rsqrt %41 : vector<16x1xf32>
      %43 = vector.broadcast %42 : vector<16x1xf32> to vector<16x32xf32>
      %44 = arith.mulf %39, %43 : vector<16x32xf32>
      %c0_27 = arith.constant 0 : index
      %c0_28 = arith.constant 0 : index
      %45 = vector.load %arg8[%c0_27, %c0_28] : memref<1x32xf32, #tpu.memory_space<vmem>>, vector<1x32xf32>
      %46 = vector.broadcast %45 : vector<1x32xf32> to vector<16x32xf32>
      %47 = arith.mulf %44, %46 : vector<16x32xf32>
      %c0_29 = arith.constant 0 : index
      %c0_30 = arith.constant 0 : index
      %48 = vector.load %arg9[%c0_29, %c0_30] : memref<1x32xf32, #tpu.memory_space<vmem>>, vector<1x32xf32>
      %49 = vector.broadcast %48 : vector<1x32xf32> to vector<16x32xf32>
      %50 = arith.addf %47, %49 : vector<16x32xf32>
      %c0_31 = arith.constant 0 : index
      %c0_32 = arith.constant 0 : index
      %51 = vector.load %arg10[%c0_31, %c0_32] : memref<16x32xf32, #tpu.memory_space<vmem>>, vector<16x32xf32>
      tpu.vector_store %arg10[%c0_31, %c0_32], %50 {strides = array<i32>} : memref<16x32xf32, #tpu.memory_space<vmem>>, vector<16x32xf32>,
    } else {
    }
    return
  }
  func.func @transform_0(%arg0: i32, %arg1: i32) -> (i32, i32) {
    %c0_i32 = arith.constant 0 : i32
    %c0_i32_0 = arith.constant 0 : i32
    return %arg0, %c0_i32 : i32, i32
  }
  func.func @transform_1(%arg0: i32, %arg1: i32) -> (i32, i32) {
    %c0_i32 = arith.constant 0 : i32
    %c0_i32_0 = arith.constant 0 : i32
    return %c0_i32, %arg1 : i32, i32
  }
  func.func @transform_2(%arg0: i32, %arg1: i32) -> (i32, i32) {
    %c0_i32 = arith.constant 0 : i32
    %c0_i32_0 = arith.constant 0 : i32
    return %c0_i32, %arg1 : i32, i32
  }
  func.func @transform_3(%arg0: i32, %arg1: i32) -> (i32, i32) {
    %c0_i32 = arith.constant 0 : i32
    %c0_i32_0 = arith.constant 0 : i32
    return %arg1, %c0_i32 : i32, i32
  }
  func.func @transform_4(%arg0: i32, %arg1: i32) -> (i32, i32) {
    %c0_i32 = arith.constant 0 : i32
    %c0_i32_0 = arith.constant 0 : i32
    %c0_i32_1 = arith.constant 0 : i32
    return %c0_i32, %c0_i32_0 : i32, i32
  }
  func.func @transform_5(%arg0: i32, %arg1: i32) -> (i32, i32) {
    %c0_i32 = arith.constant 0 : i32
    %c0_i32_0 = arith.constant 0 : i32
    return %arg0, %c0_i32 : i32, i32
  }
  func.func @transform_6(%arg0: i32, %arg1: i32) -> (i32, i32) {
    %c0_i32 = arith.constant 0 : i32
    %c0_i32_0 = arith.constant 0 : i32
    %c0_i32_1 = arith.constant 0 : i32
    return %c0_i32, %c0_i32_0 : i32, i32
  }
  func.func @transform_7(%arg0: i32, %arg1: i32) -> (i32, i32) {
    %c0_i32 = arith.constant 0 : i32
    %c0_i32_0 = arith.constant 0 : i32
    %c0_i32_1 = arith.constant 0 : i32
    return %c0_i32, %c0_i32_0 : i32, i32
  }
  func.func @transform_8(%arg0: i32, %arg1: i32) -> (i32, i32) {
    %c0_i32 = arith.constant 0 : i32
    %c0_i32_0 = arith.constant 0 : i32
    return %arg0, %c0_i32 : i32, i32
  }
}

</mosaic_0001>

<bundles_post_ra>
// kernel: transformer_forward.33
= control target key start
LH: loop header
LB: loop body
LE: loop exit
PB: predicated region body
PF: predicated region fallthrough
CT: control target
= control target key end

     0   :  { %vm19_vm0 = vcmask 785408   ;;  %v96_v1 = vmov 0.0   ;;  %vm43_vm1 = vcmask 261120   ;;  %s144_s1 = inlined_call_operand.vmem [shape: bf16[32,96], index: 1, kind: input, shape index: {}]   ;;  %s145_s0 = inlined_call_operand.vmem [shape: f32[16,32], index: 0, kind: input, shape index: {}]   ;;  %s146_s2 = inlined_call_operand.vmem [shape: f32[1,96], index: 2, kind: input, shape index: {}]   ;;  %s147_s3 = inlined_call_operand.vmem [shape: f32[16,96], index: 3, kind: output, shape index: {}]  }
   0x1   :  { %v93_v0 = vld [vmem:[%s144_s1 + $0x8] sm:$0xff]  ;;  %20 = vst.msk [vmem:[#allocation2] sm:$0xff] %vm19_vm0, %v96_v1  ;;  %v92_v2 = vld [vmem:[%s144_s1] sm:$0xff] }
   0x2   :  { %21 = vst.msk [vmem:[#allocation2 + $0x8] sm:$0xff] %vm19_vm0, %v96_v1  ;;  %53 = vmatpush.bf16.msra.mxu0 %v93_v0  ;;  %v24_v3 = vld [vmem:[%s145_s0] sm:$0xff]  ;;  %v25_v4 = vld [vmem:[%s145_s0 + $0x8] sm:$0xff] }
   0x3   :  { %v26_v5 = vpack.c.bf16 %v25_v4, %v24_v3  ;;  %v95_v10 = vld [vmem:[%s146_s2] ss:$0 sm:$0xff] }
   0x6   :  { %54 = vmatpush.bf16.msra.mxu0 %v92_v2 }
   0x8   :  { %v22_v6 = vld [vmem:[#allocation2] sm:$0xff] }
   0x9   :  { %91 = vmatmul.msk.bf16.vlgmr.msra.gmra.mxu0 %vm43_vm1, %v26_v5  ;;  %v23_v9 = vld [vmem:[#allocation2 + $0x8] sm:$0xff] }
  0x86   :  { %v56_v7 = vpop.f32.mrf.mxu0 }
  0x87   :  { %v61_v8 = vadd.f32 %v56_v7, %v22_v6 }
  0x89   :  { %64 = vst.msk [vmem:[#allocation2] sm:$0xff] %vm19_vm0, %v61_v8 }
  0x8e   :  { %v58_v11 = vpop.f32.mrf.mxu0 }
  0x8f   :  { %v62_v12 = vadd.f32 %v58_v11, %v23_v9 }
  0x90   :  { %v69_v13 = vld [vmem:[#allocation2] sm:$0xff] }
  0x91   :  { %v75_v14 = vadd.f32 %v95_v10, %v69_v13  ;;  %65 = vst.msk [vmem:[#allocation2 + $0x8] sm:$0xff] %vm19_vm0, %v62_v12 }
  0x93   :  { %77 = vst.msk [vmem:[%s147_s3] sm:$0xff] %vm19_vm0, %v75_v14 }
  0x98   :  { %v70_v15 = vld [vmem:[#allocation2 + $0x8] sm:$0xff] }
  0x99   :  { %v76_v16 = vadd.f32 %v95_v10, %v70_v15 }
  0x9b   :  { %78 = vst.msk [vmem:[%s147_s3 + $0x8] sm:$0xff] %vm19_vm0, %v76_v16 }

// kernel: transformer_forward.36
= control target key start
LH: loop header
LB: loop body
LE: loop exit
PB: predicated region body
PF: predicated region fallthrough
CT: control target
= control target key end

     0   :  { %vm19_vm0 = vcmask 261120   ;;  %v95_v1 = vmov 0.0   ;;  %s144_s1 = inlined_call_operand.vmem [shape: bf16[32,32], index: 1, kind: input, shape index: {}]   ;;  %s145_s0 = inlined_call_operand.vmem [shape: f32[16,32], index: 0, kind: input, shape index: {}]   ;;  %s146_s2 = inlined_call_operand.vmem [shape: f32[1,32], index: 2, kind: input, shape index: {}]   ;;  %s147_s3 = inlined_call_operand.vmem [shape: f32[16,32], index: 3, kind: output, shape index: {}]  }
   0x1   :  { %v92_v0 = vld [vmem:[%s144_s1 + $0x8] sm:$0xff]  ;;  %20 = vst.msk [vmem:[#allocation2] sm:$0xff] %vm19_vm0, %v95_v1  ;;  %v91_v2 = vld [vmem:[%s144_s1] sm:$0xff] }
   0x2   :  { %21 = vst.msk [vmem:[#allocation2 + $0x8] sm:$0xff] %vm19_vm0, %v95_v1  ;;  %53 = vmatpush.bf16.msra.mxu0 %v92_v0  ;;  %v24_v3 = vld [vmem:[%s145_s0] sm:$0xff]  ;;  %v25_v4 = vld [vmem:[%s145_s0 + $0x8] sm:$0xff] }
   0x3   :  { %v26_v5 = vpack.c.bf16 %v25_v4, %v24_v3  ;;  %v94_v10 = vld [vmem:[%s146_s2] ss:$0 sm:$0xff] }
   0x6   :  { %54 = vmatpush.bf16.msra.mxu0 %v91_v2 }
   0x8   :  { %v22_v6 = vld [vmem:[#allocation2] sm:$0xff] }
   0x9   :  { %90 = vmatmul.msk.bf16.vlgmr.msra.gmra.mxu0 %vm19_vm0, %v26_v5  ;;  %v23_v9 = vld [vmem:[#allocation2 + $0x8] sm:$0xff] }
  0x86   :  { %v56_v7 = vpop.f32.mrf.mxu0 }
  0x87   :  { %v61_v8 = vadd.f32 %v56_v7, %v22_v6 }
  0x89   :  { %63 = vst.msk [vmem:[#allocation2] sm:$0xff] %vm19_vm0, %v61_v8 }
  0x8e   :  { %v58_v11 = vpop.f32.mrf.mxu0 }
  0x8f   :  { %v62_v12 = vadd.f32 %v58_v11, %v23_v9 }
  0x90   :  { %v68_v13 = vld [vmem:[#allocation2] sm:$0xff] }
  0x91   :  { %v74_v14 = vadd.f32 %v94_v10, %v68_v13  ;;  %64 = vst.msk [vmem:[#allocation2 + $0x8] sm:$0xff] %vm19_vm0, %v62_v12 }
  0x93   :  { %76 = vst.msk [vmem:[%s147_s3] sm:$0xff] %vm19_vm0, %v74_v14 }
  0x98   :  { %v69_v15 = vld [vmem:[#allocation2 + $0x8] sm:$0xff] }
  0x99   :  { %v75_v16 = vadd.f32 %v94_v10, %v69_v15 }
  0x9b   :  { %77 = vst.msk [vmem:[%s147_s3 + $0x8] sm:$0xff] %vm19_vm0, %v75_v16 }

// kernel: transformer_forward.35
= control target key start
LH: loop header
LB: loop body
LE: loop exit
PB: predicated region body
PF: predicated region fallthrough
CT: control target
= control target key end

     0   :  { %vm28_vm0 = vcmask 261120   ;;  %v180_v1 = vmov 0.0   ;;  %v181_v23 = vmov 32.0   ;;  %s261_s1 = inlined_call_operand.vmem [shape: bf16[32,32], index: 1, kind: input, shape index: {}]   ;;  %s262_s0 = inlined_call_operand.vmem [shape: f32[16,32], index: 0, kind: input, shape index: {}]   ;;  %s263_s2 = inlined_call_operand.vmem [shape: f32[1,32], index: 2, kind: input, shape index: {}]   ;;  %s264_s3 = inlined_call_operand.vmem [shape: f32[16,32], index: 3, kind: input, shape index: {}]   ;;  %s265_s4 = inlined_call_operand.vmem [shape: f32[1,32], index: 4, kind: input, shape index: {}]   ;;  %s266_s5 = inlined_call_operand.vmem [shape: f32[1,32], index: 5, kind: input, shape index: {}]   ;;  %s267_s6 = inlined_call_operand.vmem [shape: f32[16,32], index: 6, kind: output, shape index: {}]  }
   0x1   :  { %v168_v0 = vld [vmem:[%s261_s1 + $0x8] sm:$0xff]  ;;  %29 = vst.msk [vmem:[#allocation2] sm:$0xff] %vm28_vm0, %v180_v1  ;;  %v167_v2 = vld [vmem:[%s261_s1] sm:$0xff]  ;;  %174 = vrcp.f32 %v181_v23 }
   0x2   :  { %30 = vst.msk [vmem:[#allocation2 + $0x8] sm:$0xff] %vm28_vm0, %v180_v1  ;;  %62 = vmatpush.bf16.msra.mxu0 %v168_v0  ;;  %v33_v3 = vld [vmem:[%s262_s0] sm:$0xff]  ;;  %v34_v4 = vld [vmem:[%s262_s0 + $0x8] sm:$0xff] }
   0x3   :  { %v35_v5 = vpack.c.bf16 %v34_v4, %v33_v3  ;;  %v171_v10 = vld [vmem:[%s263_s2] ss:$0 sm:$0xff]  ;;  %v86_v19 = vld [vmem:[%s264_s3 + $0x8] sm:$0xff] }
   0x4   :  { %v85_v14 = vld [vmem:[%s264_s3] sm:$0xff] }
   0x5   :  { %v172_v54 = vld [vmem:[%s265_s4] ss:$0 sm:$0xff] }
   0x6   :  { %63 = vmatpush.bf16.msra.mxu0 %v167_v2  ;;  %v173_v57 = vld [vmem:[%s266_s5] ss:$0 sm:$0xff] }
   0x7   :  { %v175_v24 = vpop.eup %174 }
   0x8   :  { %v31_v6 = vld [vmem:[#allocation2] sm:$0xff]  ;;  %v96_v25 = vmul.f32 32.0, %v175_v24  ;;  %vm100_vm1 = vweird.f32 %v175_v24 }
   0x9   :  { %166 = vmatmul.msk.bf16.vlgmr.msra.gmra.mxu0 %vm28_vm0, %v35_v5  ;;  %v32_v9 = vld [vmem:[#allocation2 + $0x8] sm:$0xff] }
   0xa   :  { %v97_v26 = vsub.f32 1.0, %v96_v25 }
   0xc   :  { %v98_v27 = vmul.f32 %v175_v24, %v97_v26 }
   0xe   :  { %v99_v28 = vadd.f32 %v175_v24, %v98_v27 }
  0x10   :  { %v101_v29 = vsel %vm100_vm1, %v175_v24, %v99_v28 }
  0x86   :  { %v65_v7 = vpop.f32.mrf.mxu0 }
  0x87   :  { %v70_v8 = vadd.f32 %v65_v7, %v31_v6 }
  0x89   :  { %72 = vst.msk [vmem:[#allocation2] sm:$0xff] %vm28_vm0, %v70_v8 }
  0x8e   :  { %v67_v11 = vpop.f32.mrf.mxu0 }
  0x8f   :  { %v71_v12 = vadd.f32 %v67_v11, %v32_v9 }
  0x90   :  { %v77_v13 = vld [vmem:[#allocation2] sm:$0xff] }
  0x91   :  { %73 = vst.msk [vmem:[#allocation2 + $0x8] sm:$0xff] %vm28_vm0, %v71_v12  ;;  %v83_v15 = vadd.f32 %v171_v10, %v77_v13 }
  0x93   :  { %v87_v16 = vadd.f32 %v85_v14, %v83_v15 }
  0x95   :  { %v89_v17 = vsel %vm28_vm0, %v87_v16, 0.0 }
  0x96   :  { %90 = vadd.xlane.f32.xlu0 %v89_v17 }
  0x98   :  { %v78_v18 = vld [vmem:[#allocation2 + $0x8] sm:$0xff] }
  0x99   :  { %v84_v20 = vadd.f32 %v171_v10, %v78_v18 }
  0x9b   :  { %v88_v21 = vadd.f32 %v86_v19, %v84_v20 }
  0x9d   :  { %v92_v22 = vsel %vm28_vm0, %v88_v21, 0.0 }
  0x9e   :  { %93 = vadd.xlane.f32.xlu0 %v92_v22 }
 0x109   :  { %v91_v30 = vpop.xlane.xlu0 %90 }
 0x10a   :  { %v102_v31 = vmul.f32 %v101_v29, %v91_v30 }
 0x10c   :  { %v104_v32 = vsub.f32 %v87_v16, %v102_v31 }
 0x10e   :  { %v106_v33 = vmul.f32 %v104_v32, %v104_v32 }
 0x110   :  { %v108_v34 = vsel %vm28_vm0, %v106_v33, 0.0 }
 0x111   :  { %109 = vadd.xlane.f32.xlu1 %v108_v34  ;;  %v94_v35 = vpop.xlane.xlu0 %93 }
 0x112   :  { %v103_v36 = vmul.f32 %v101_v29, %v94_v35 }
 0x114   :  { %v105_v37 = vsub.f32 %v88_v21, %v103_v36 }
 0x116   :  { %v107_v38 = vmul.f32 %v105_v37, %v105_v37 }
 0x118   :  { %v111_v39 = vsel %vm28_vm0, %v107_v38, 0.0 }
 0x119   :  { %112 = vadd.xlane.f32.xlu1 %v111_v39 }
 0x184   :  { %v110_v40 = vpop.xlane.xlu1 %109 }
 0x185   :  { %v114_v41 = vmul.f32 %v110_v40, %v101_v29 }
 0x187   :  { %v116_v42 = vadd.f32 1e-12, %v114_v41 }
 0x189   :  { %176 = vrsqrt.f32 %v116_v42  ;;  %vm124_vm3 = vweird.f32 %v116_v42 }
 0x18c   :  { %v113_v43 = vpop.xlane.xlu1 %112 }
 0x18d   :  { %v115_v44 = vmul.f32 %v113_v43, %v101_v29 }
 0x18f   :  { %v177_v45 = vpop.eup %176  ;;  %v117_v46 = vadd.f32 1e-12, %v115_v44 }
 0x190   :  { %v119_v47 = vmul.f32 %v177_v45, %v116_v42  ;;  %vm125_vm2 = vweird.f32 %v177_v45 }
 0x191   :  { %178 = vrsqrt.f32 %v117_v46  ;;  %vm126_vm4 = vmor %vm124_vm3, %vm125_vm2  ;;  %vm134_vm6 = vweird.f32 %v117_v46 }
 0x192   :  { %v120_v48 = vmul.f32 %v177_v45, %v119_v47 }
 0x194   :  { %v121_v49 = vmul.f32 0.5, %v120_v48 }
 0x196   :  { %v122_v50 = vsub.f32 1.5, %v121_v49 }
 0x197   :  { %v179_v51 = vpop.eup %178 }
 0x198   :  { %v123_v52 = vmul.f32 %v177_v45, %v122_v50  ;;  %v129_v53 = vmul.f32 %v179_v51, %v117_v46  ;;  %vm135_vm5 = vweird.f32 %v179_v51 }
 0x199   :  { %vm136_vm7 = vmor %vm134_vm6, %vm135_vm5 }
 0x19a   :  { %v127_v55 = vsel %vm126_vm4, %v177_v45, %v123_v52  ;;  %v130_v56 = vmul.f32 %v179_v51, %v129_v53 }
 0x19b   :  { %v138_v58 = vmul.f32 %v127_v55, %v104_v32 }
 0x19c   :  { %v131_v59 = vmul.f32 0.5, %v130_v56 }
 0x19d   :  { %v144_v60 = vmul.f32 %v172_v54, %v138_v58 }
 0x19e   :  { %v132_v61 = vsub.f32 1.5, %v131_v59 }
 0x19f   :  { %v150_v62 = vadd.f32 %v173_v57, %v144_v60 }
 0x1a0   :  { %v133_v63 = vmul.f32 %v179_v51, %v132_v61 }
 0x1a1   :  { %152 = vst.msk [vmem:[%s267_s6] sm:$0xff] %vm28_vm0, %v150_v62 }
 0x1a2   :  { %v137_v0 = vsel %vm136_vm7, %v179_v51, %v133_v63 }
 0x1a3   :  { %v139_v1 = vmul.f32 %v137_v0, %v105_v37 }
 0x1a5   :  { %v145_v2 = vmul.f32 %v172_v54, %v139_v1 }
 0x1a7   :  { %v151_v3 = vadd.f32 %v173_v57, %v145_v2 }
 0x1a9   :  { %153 = vst.msk [vmem:[%s267_s6 + $0x8] sm:$0xff] %vm28_vm0, %v151_v3 }

// kernel: transformer_forward.34
= control target key start
LH: loop header
LB: loop body
LE: loop exit
PB: predicated region body
PF: predicated region fallthrough
CT: control target
= control target key end

     0   :  { %s674_s15 = smov 0   ;;  %s738_s0 = inlined_call_operand.vmem [shape: f32[2,4,8,8], index: 0, kind: input, shape index: {}]   ;;  %s739_s1 = inlined_call_operand.vmem [shape: f32[2,4,8,8], index: 1, kind: input, shape index: {}]   ;;  %s740_s2 = inlined_call_operand.vmem [shape: f32[2,4,8,8], index: 2, kind: input, shape index: {}]   ;;  %s741_s3 = inlined_call_operand.vmem [shape: s32[2,1,8,8], index: 3, kind: input, shape index: {}]   ;;  %s742_s4 = inlined_call_operand.vmem [shape: f32[2,4,8,8], index: 4, kind: output, shape index: {}]  }
   0x1 LB: > { %s589_s16 = sadd.s32 4294967295, %s647_s15   ;;  %p593_p0 = scmp.ge.s32.totalorder %s647_s15, 1  ;;  %s647_s15 = sphi %s674_s15, %s14_s15  }
   0x2   : > { %p191_p1 = scmp.lt.s32.totalorder %s647_s15, 3 }
   0x4   : > { %p192_p2 = pnand %p593_p0, %p191_p1 }
   0x5   : > { %p231_p3 = scmp.lt.s32.totalorder (!%p192_p2), %s589_s16, 1 }
   0x6   : > { %195 = sbr.rel (%p192_p2) target bundleno = 564 (0x234), region = 36 }
   0xb   : > { %s744_s16 = smov (!%p231_p3, %s589_s16), 1  ;;  %vm281_vm0 = vcmask 64512   ;;  %vm420_vm2 = vcmask 1043456  }
   0xc   : > { %s685_s17 = sshll.u32 %s744_s16, 5  ;;  %s600_s24 = sshll.u32 %s744_s16, 3 }
   0xd   : > { %s240_s20 = scalar_lea.vmem %s739_s1, %s685_s17  ;;  %s235_s23 = scalar_lea.vmem %s738_s0, %s685_s17 }
   0xe   : > { %v264_v0 = vld [vmem:[%s240_s20] sm:$0xff]  ;;  %v266_v1 = vld [vmem:[%s240_s20 + $0x10] sm:$0xff]  ;;  %v267_v2 = vld [vmem:[%s240_s20 + $0x18] sm:$0xff]  ;;  %s249_s27 = scalar_lea.vmem %s741_s3, %s600_s24  ;;  %s245_s30 = scalar_lea.vmem %s740_s2, %s685_s17 }
   0xf   : > { %v268_v3 = vpack.c.bf16 %v264_v0, %v264_v0  ;;  %v270_v4 = vpack.c.bf16 %v266_v1, %v266_v1  ;;  %v271_v5 = vpack.c.bf16 %v267_v2, %v267_v2  ;;  %v265_v6 = vld [vmem:[%s240_s20 + $0x8] sm:$0xff]  ;;  %v256_v11 = vld [vmem:[%s235_s23] sm:$0xff]  ;;  %v258_v12 = vld [vmem:[%s235_s23 + $0x10] sm:$0xff]  ;;  %s254_s7 = scalar_lea.vmem %s742_s4, %s685_s17 }
  0x10   : > { %v269_v10 = vpack.c.bf16 %v265_v6, %v265_v6  ;;  %v259_v13 = vld [vmem:[%s235_s23 + $0x18] sm:$0xff]  ;;  %v257_v15 = vld [vmem:[%s235_s23 + $0x8] sm:$0xff]  ;;  %v260_v16 = vpack.c.bf16 %v256_v11, %v256_v11  ;;  %v262_v17 = vpack.c.bf16 %v258_v12, %v258_v12  ;;  %v280_v20 = vld [vmem:[%s249_s27] sm:$0xff] }
  0x11   : > { %v286_v7 = vsel %vm281_vm0, %v268_v3, 0  ;;  %v324_v8 = vsel %vm281_vm0, %v270_v4, 0  ;;  %v343_v9 = vsel %vm281_vm0, %v271_v5, 0  ;;  %v263_v18 = vpack.c.bf16 %v259_v13, %v259_v13  ;;  %v272_v61 = vld [vmem:[%s245_s30] sm:$0xff]  ;;  %v274_v0 = vld [vmem:[%s245_s30 + $0x10] sm:$0xff]  ;;  %v273_v2 = vld [vmem:[%s245_s30 + $0x8] sm:$0xff] }
  0x12   : > { %295 = vmatpush.bf16.xpose.msra.mxu0 %v286_v7  ;;  %333 = vmatpush.bf16.xpose.msra.mxu2 %v324_v8  ;;  %v305_v14 = vsel %vm281_vm0, %v269_v10, 0  ;;  %v261_v19 = vpack.c.bf16 %v257_v15, %v257_v15  ;;  %vm362_vm1 = vcmp.ne.s32.totalorder %v280_v20, 0  ;;  %v276_v62 = vpack.c.bf16 %v272_v61, %v272_v61  ;;  %v275_v6 = vld [vmem:[%s245_s30 + $0x18] sm:$0xff] }
  0x13   : > { %352 = vmatpush.bf16.xpose.msra.mxu3 %v343_v9  ;;  %314 = vmatpush.bf16.xpose.msra.mxu1 %v305_v14  ;;  %v278_v1 = vpack.c.bf16 %v274_v0, %v274_v0  ;;  %v277_v4 = vpack.c.bf16 %v273_v2, %v273_v2  ;;  %v279_v7 = vpack.c.bf16 %v275_v6, %v275_v6 }
  0x14   : > { %v422_v63 = vsel %vm420_vm2, %v276_v62, 0 }
  0x15   : > { %v460_v3 = vsel %vm420_vm2, %v278_v1, 0  ;;  %v441_v5 = vsel %vm420_vm2, %v277_v4, 0  ;;  %v479_v8 = vsel %vm420_vm2, %v279_v7, 0 }
  0x19   : > { %603 = vmatmul.msk.bf16.vlgmr.msra.gmra.mxu0 %vm281_vm0, %v260_v16  ;;  %605 = vmatmul.msk.bf16.vlgmr.msra.gmra.mxu2 %vm281_vm0, %v262_v17 }
  0x1a   : > { %606 = vmatmul.msk.bf16.vlgmr.msra.gmra.mxu3 %vm281_vm0, %v263_v18  ;;  %604 = vmatmul.msk.bf16.vlgmr.msra.gmra.mxu1 %vm281_vm0, %v261_v19 }
  0x1b   : > { %431 = vmatpush.bf16.msrb.mxu0 %v422_v63  ;;  %469 = vmatpush.bf16.msrb.mxu2 %v460_v3 }
  0x1c   : > { %450 = vmatpush.bf16.msrb.mxu1 %v441_v5  ;;  %488 = vmatpush.bf16.msrb.mxu3 %v479_v8 }
  0x96   : > { %v297_v21 = vpop.f32.mrf.mxu0 }
  0x97   : > { %v358_v22 = vmul.f32 0.35355338, %v297_v21  ;;  %v316_v23 = vpop.f32.mrf.mxu1 }
  0x98   : > { %v359_v25 = vmul.f32 0.35355338, %v316_v23 }
  0x99   : > { %v365_v24 = vsel %vm362_vm1, %v358_v22, -1e+09 }
  0x9a   : > { %v369_v26 = vsel %vm281_vm0, %v365_v24, -inf  ;;  %v366_v30 = vsel %vm362_vm1, %v359_v25, -1e+09 }
  0x9b   : > { %370 = vmax.xlane.f32.xlu1 %v369_v26  ;;  %v372_v35 = vsel %vm281_vm0, %v366_v30, -inf }
  0x9c   : > { %v335_v27 = vpop.f32.mrf.mxu2 }
  0x9d   : > { %v360_v28 = vmul.f32 0.35355338, %v335_v27  ;;  %v354_v29 = vpop.f32.mrf.mxu3 }
  0x9e   : > { %v299_v31 = vpop.f32.mrf.mxu0  ;;  %v361_v32 = vmul.f32 0.35355338, %v354_v29 }
  0x9f   : > { %v367_v33 = vsel %vm362_vm1, %v360_v28, -1e+09  ;;  %v318_v36 = vpop.f32.mrf.mxu1 }
  0xa0   : > { %v375_v34 = vsel %vm281_vm0, %v367_v33, -inf  ;;  %v368_v37 = vsel %vm362_vm1, %v361_v32, -1e+09 }
  0xa1   : > { %376 = vmax.xlane.f32.xlu0 %v375_v34  ;;  %v378_v40 = vsel %vm281_vm0, %v368_v37, -inf }
  0xa3   : > { %373 = vmax.xlane.f32.xlu1 %v372_v35 }
  0xa4   : > { %v337_v38 = vpop.f32.mrf.mxu2 }
  0xa5   : > { %v356_v39 = vpop.f32.mrf.mxu3 }
  0xa9   : > { %379 = vmax.xlane.f32.xlu0 %v378_v40 }
 0x10e   : > { %v371_v41 = vpop.xlane.xlu1 %370 }
 0x10f   : > { %v381_v42 = vsub.f32 %v365_v24, %v371_v41 }
 0x111   : > { %v385_v43 = vmul.f32 1.442695, %v381_v42 }
 0x113   : > { %625 = vpow2.f32 %v385_v43 }
 0x114   : > { %v377_v44 = vpop.xlane.xlu0 %376 }
 0x115   : > { %v383_v45 = vsub.f32 %v367_v33, %v377_v44 }
 0x116   : > { %v374_v46 = vpop.xlane.xlu1 %373 }
 0x117   : > { %v389_v47 = vmul.f32 1.442695, %v383_v45  ;;  %v382_v48 = vsub.f32 %v366_v30, %v374_v46 }
 0x119   : > { %v626_v49 = vpop.eup %625  ;;  %627 = vpow2.f32 %v389_v47  ;;  %v387_v50 = vmul.f32 1.442695, %v382_v48 }
 0x11a   : > { %v393_v51 = vsel %vm281_vm0, %v626_v49, 0.0 }
 0x11b   : > { %629 = vpow2.f32 %v387_v50  ;;  %394 = vadd.xlane.f32.xlu0 %v393_v51 }
 0x11c   : > { %v380_v52 = vpop.xlane.xlu0 %379 }
 0x11d   : > { %v384_v53 = vsub.f32 %v368_v37, %v380_v52 }
 0x11f   : > { %v628_v54 = vpop.eup %627  ;;  %v391_v55 = vmul.f32 1.442695, %v384_v53 }
 0x120   : > { %v399_v56 = vsel %vm281_vm0, %v628_v54, 0.0 }
 0x121   : > { %v630_v57 = vpop.eup %629  ;;  %631 = vpow2.f32 %v391_v55  ;;  %400 = vadd.xlane.f32.xlu2 %v399_v56 }
 0x122   : > { %v396_v58 = vsel %vm281_vm0, %v630_v57, 0.0 }
 0x123   : > { %397 = vadd.xlane.f32.xlu1 %v396_v58 }
 0x127   : > { %v632_v59 = vpop.eup %631 }
 0x128   : > { %v402_v60 = vsel %vm281_vm0, %v632_v59, 0.0 }
 0x129   : > { %403 = vadd.xlane.f32.xlu2 %v402_v60 }
 0x18e   : > { %v395_v9 = vpop.xlane.xlu0 %394 }
 0x18f   : > { %633 = vrcp.f32 %v395_v9 }
 0x194   : > { %v401_v10 = vpop.xlane.xlu2 %400 }
 0x195   : > { %v634_v11 = vpop.eup %633  ;;  %635 = vrcp.f32 %v401_v10 }
 0x196   : > { %v409_v12 = vmul.f32 %v634_v11, %v626_v49  ;;  %v398_v13 = vpop.xlane.xlu1 %397 }
 0x197   : > { %637 = vrcp.f32 %v398_v13 }
 0x198   : > { %v413_v14 = vpack.c.bf16 %v409_v12, %v409_v12 }
 0x19a   : > { %607 = vmatmul.msk.bf16.vlgmr.msrb.gmra.mxu0 %vm281_vm0, %v413_v14 }
 0x19b   : > { %v636_v15 = vpop.eup %635 }
 0x19c   : > { %v411_v16 = vmul.f32 %v636_v15, %v628_v54  ;;  %v404_v17 = vpop.xlane.xlu2 %403 }
 0x19d   : > { %v638_v18 = vpop.eup %637  ;;  %639 = vrcp.f32 %v404_v17 }
 0x19e   : > { %v410_v19 = vmul.f32 %v638_v18, %v630_v57  ;;  %v415_v20 = vpack.c.bf16 %v411_v16, %v411_v16 }
 0x1a0   : > { %v414_v21 = vpack.c.bf16 %v410_v19, %v410_v19  ;;  %609 = vmatmul.msk.bf16.vlgmr.msrb.gmra.mxu2 %vm281_vm0, %v415_v20 }
 0x1a2   : > { %608 = vmatmul.msk.bf16.vlgmr.msrb.gmra.mxu1 %vm281_vm0, %v414_v21 }
 0x1a3   : > { %v640_v22 = vpop.eup %639 }
 0x1a4   : > { %v412_v23 = vmul.f32 %v640_v22, %v632_v59 }
 0x1a6   : > { %v416_v24 = vpack.c.bf16 %v412_v23, %v412_v23 }
 0x1a8   : > { %610 = vmatmul.msk.bf16.vlgmr.msrb.gmra.mxu3 %vm281_vm0, %v416_v24 }
 0x217   : > { %v433_v25 = vpop.f32.mrf.mxu0 }
 0x218   : > { %494 = vst.msk [vmem:[%s254_s7] sm:$0xff] %vm281_vm0, %v433_v25 }
 0x21f   : > { %v435_v26 = vpop.f32.mrf.mxu0  ;;  %v452_v27 = vpop.f32.mrf.mxu1 }
 0x220   : > { %495 = vst.msk [vmem:[%s254_s7 + $0x8] sm:$0xff] %vm281_vm0, %v452_v27 }
 0x223   : > { %v471_v28 = vpop.f32.mrf.mxu2 }
 0x224   : > { %496 = vst.msk [vmem:[%s254_s7 + $0x10] sm:$0xff] %vm281_vm0, %v471_v28 }
 0x227   : > { %v454_v29 = vpop.f32.mrf.mxu1 }
 0x22b   : > { %v473_v30 = vpop.f32.mrf.mxu2  ;;  %v490_v31 = vpop.f32.mrf.mxu3 }
 0x22c   : > { %497 = vst.msk [vmem:[%s254_s7 + $0x18] sm:$0xff] %vm281_vm0, %v490_v31 }
 0x233   : > { %v492_v32 = vpop.f32.mrf.mxu3 }
 0x234 PF: > { %s14_s15 = sadd.s32 1, %s647_s15  }
 0x235   : > { %p11_p4 = scmp.ge.s32.totalorder %s14_s15, 4  }
 0x237   :  { %13 = sbr.rel (!%p11_p4) target bundleno = 1 (0x1), region = 75 }

// kernel: transformer_forward.37
= control target key start
LH: loop header
LB: loop body
LE: loop exit
PB: predicated region body
PF: predicated region fallthrough
CT: control target
= control target key end

     0   :  { %vm19_vm0 = vcmask 523264   ;;  %v96_v1 = vmov 0.0   ;;  %vm43_vm1 = vcmask 261120   ;;  %s144_s1 = inlined_call_operand.vmem [shape: bf16[32,64], index: 1, kind: input, shape index: {}]   ;;  %s145_s0 = inlined_call_operand.vmem [shape: f32[16,32], index: 0, kind: input, shape index: {}]   ;;  %s146_s2 = inlined_call_operand.vmem [shape: f32[1,64], index: 2, kind: input, shape index: {}]   ;;  %s147_s3 = inlined_call_operand.vmem [shape: f32[16,64], index: 3, kind: output, shape index: {}]  }
   0x1   :  { %v93_v0 = vld [vmem:[%s144_s1 + $0x8] sm:$0xff]  ;;  %20 = vst.msk [vmem:[#allocation2] sm:$0xff] %vm19_vm0, %v96_v1  ;;  %v92_v2 = vld [vmem:[%s144_s1] sm:$0xff] }
   0x2   :  { %21 = vst.msk [vmem:[#allocation2 + $0x8] sm:$0xff] %vm19_vm0, %v96_v1  ;;  %53 = vmatpush.bf16.msra.mxu0 %v93_v0  ;;  %v24_v3 = vld [vmem:[%s145_s0] sm:$0xff]  ;;  %v25_v4 = vld [vmem:[%s145_s0 + $0x8] sm:$0xff] }
   0x3   :  { %v26_v5 = vpack.c.bf16 %v25_v4, %v24_v3  ;;  %v95_v10 = vld [vmem:[%s146_s2] ss:$0 sm:$0xff] }
   0x6   :  { %54 = vmatpush.bf16.msra.mxu0 %v92_v2 }
   0x8   :  { %v22_v6 = vld [vmem:[#allocation2] sm:$0xff] }
   0x9   :  { %91 = vmatmul.msk.bf16.vlgmr.msra.gmra.mxu0 %vm43_vm1, %v26_v5  ;;  %v23_v9 = vld [vmem:[#allocation2 + $0x8] sm:$0xff] }
  0x86   :  { %v56_v7 = vpop.f32.mrf.mxu0 }
  0x87   :  { %v61_v8 = vadd.f32 %v56_v7, %v22_v6 }
  0x89   :  { %64 = vst.msk [vmem:[#allocation2] sm:$0xff] %vm19_vm0, %v61_v8 }
  0x8e   :  { %v58_v11 = vpop.f32.mrf.mxu0 }
  0x8f   :  { %v62_v12 = vadd.f32 %v58_v11, %v23_v9 }
  0x90   :  { %v69_v13 = vld [vmem:[#allocation2] sm:$0xff] }
  0x91   :  { %v75_v14 = vadd.f32 %v95_v10, %v69_v13  ;;  %65 = vst.msk [vmem:[#allocation2 + $0x8] sm:$0xff] %vm19_vm0, %v62_v12 }
  0x93   :  { %77 = vst.msk [vmem:[%s147_s3] sm:$0xff] %vm19_vm0, %v75_v14 }
  0x98   :  { %v70_v15 = vld [vmem:[#allocation2 + $0x8] sm:$0xff] }
  0x99   :  { %v76_v16 = vadd.f32 %v95_v10, %v70_v15 }
  0x9b   :  { %78 = vst.msk [vmem:[%s147_s3 + $0x8] sm:$0xff] %vm19_vm0, %v76_v16 }

// kernel: transformer_forward.49
= control target key start
LH: loop header
LB: loop body
LE: loop exit
PB: predicated region body
PF: predicated region fallthrough
CT: control target
= control target key end

     0   :  { %vm42_vm0 = vcmask 261120   ;;  %s134_s1 = inlined_call_operand.vmem [shape: bf16[32,128], index: 1, kind: input, shape index: {}]   ;;  %s135_s0 = inlined_call_operand.vmem [shape: f32[16,32], index: 0, kind: input, shape index: {}]   ;;  %s136_s2 = inlined_call_operand.vmem [shape: f32[1,128], index: 2, kind: input, shape index: {}]   ;;  %s137_s3 = inlined_call_operand.vmem [shape: f32[16,128], index: 3, kind: output, shape index: {}]  }
   0x1   :  { %v91_v0 = vld [vmem:[%s134_s1 + $0x8] sm:$0xff]  ;;  %v90_v1 = vld [vmem:[%s134_s1] sm:$0xff] }
   0x2   :  { %52 = vmatpush.bf16.msra.mxu0 %v91_v0  ;;  %v23_v2 = vld [vmem:[%s135_s0] sm:$0xff]  ;;  %v24_v3 = vld [vmem:[%s135_s0 + $0x8] sm:$0xff] }
   0x3   :  { %v25_v4 = vpack.c.bf16 %v24_v3, %v23_v2  ;;  %v92_v5 = vld [vmem:[%s136_s2] ss:$0 sm:$0xff] }
   0x6   :  { %53 = vmatpush.bf16.msra.mxu0 %v90_v1 }
   0x9   :  { %89 = vmatmul.msk.bf16.vlgmr.msra.gmra.mxu0 %vm42_vm0, %v25_v4 }
  0x86   :  { %v55_v6 = vpop.f32.mrf.mxu0 }
  0x87   :  { %v73_v7 = vadd.f32 %v92_v5, %v55_v6 }
  0x89   :  { %75 = vst [vmem:[%s137_s3] sm:$0xff] %v73_v7 }
  0x8e   :  { %v57_v8 = vpop.f32.mrf.mxu0 }
  0x8f   :  { %v74_v9 = vadd.f32 %v92_v5, %v57_v8 }
  0x91   :  { %76 = vst [vmem:[%s137_s3 + $0x8] sm:$0xff] %v74_v9 }

// kernel: transformer_forward.28
= control target key start
LH: loop header
LB: loop body
LE: loop exit
PB: predicated region body
PF: predicated region fallthrough
CT: control target
= control target key end

     0   :  { %vm34_vm0 = vcmask 261120   ;;  %v265_v9 = vmov 0.0   ;;  %vm115_vm1 = vcmask 523264   ;;  %v266_v35 = vmov 32.0   ;;  %s371_s1 = inlined_call_operand.vmem [shape: bf16[32,64], index: 1, kind: input, shape index: {}]   ;;  %s372_s0 = inlined_call_operand.vmem [shape: f32[16,32], index: 0, kind: input, shape index: {}, may-alias: {0,5}]   ;;  %s373_s2 = inlined_call_operand.vmem [shape: f32[1,64], index: 2, kind: input, shape index: {}]   ;;  %s374_s3 = inlined_call_operand.vmem [shape: bf16[64,32], index: 3, kind: input, shape index: {}]   ;;  %s375_s4 = inlined_call_operand.vmem [shape: f32[1,32], index: 4, kind: input, shape index: {}]   ;;  %s376_s5 = inlined_call_operand.vmem [shape: f32[16,32], index: 5, kind: input, shape index: {}, may-alias: {0,5}]   ;;  %s377_s6 = inlined_call_operand.vmem [shape: f32[1,32], index: 6, kind: input, shape index: {}]   ;;  %s378_s7 = inlined_call_operand.vmem [shape: f32[1,32], index: 7, kind: input, shape index: {}]   ;;  %s379_s8 = inlined_call_operand.vmem [shape: f32[16,32], index: 8, kind: output, shape index: {}]  }
   0x1   :  { %v248_v0 = vld [vmem:[%s371_s1 + $0x8] sm:$0xff]  ;;  %v247_v1 = vld [vmem:[%s371_s1] sm:$0xff]  ;;  %v252_v5 = vld [vmem:[%s374_s3 + $0x18] sm:$0xff]  ;;  %35 = vst.msk [vmem:[#allocation2] sm:$0xff] %vm34_vm0, %v265_v9  ;;  %259 = vrcp.f32 %v266_v35 }
   0x2   :  { %70 = vmatpush.bf16.msra.mxu0 %v248_v0  ;;  %v37_v2 = vld [vmem:[%s372_s0] sm:$0xff]  ;;  %v38_v3 = vld [vmem:[%s372_s0 + $0x8] sm:$0xff]  ;;  %123 = vmatpush.bf16.msra.mxu1 %v252_v5  ;;  %v251_v6 = vld [vmem:[%s374_s3 + $0x10] sm:$0xff]  ;;  %36 = vst.msk [vmem:[#allocation2 + $0x8] sm:$0xff] %vm34_vm0, %v265_v9 }
   0x3   :  { %v39_v4 = vpack.c.bf16 %v38_v3, %v37_v2  ;;  %v250_v7 = vld [vmem:[%s374_s3 + $0x8] sm:$0xff]  ;;  %v249_v8 = vld [vmem:[%s374_s3] sm:$0xff] }
   0x4   :  { %v255_v11 = vld [vmem:[%s373_s2] ss:$0 sm:$0xff]  ;;  %v149_v31 = vld [vmem:[%s376_s5 + $0x8] sm:$0xff] }
   0x5   :  { %v256_v22 = vld [vmem:[%s375_s4] ss:$0 sm:$0xff] }
   0x6   :  { %71 = vmatpush.bf16.msra.mxu0 %v247_v1  ;;  %124 = vmatpush.bf16.msra.mxu1 %v251_v6  ;;  %v148_v26 = vld [vmem:[%s376_s5] sm:$0xff] }
   0x7   :  { %v260_v36 = vpop.eup %259  ;;  %v257_v2 = vld [vmem:[%s377_s6] ss:$0 sm:$0xff] }
   0x8   :  { %v80_v18 = vld [vmem:[#allocation2] sm:$0xff]  ;;  %v159_v37 = vmul.f32 32.0, %v260_v36  ;;  %vm163_vm2 = vweird.f32 %v260_v36 }
   0x9   :  { %229 = vmatmul.msk.bf16.vlgmr.msra.gmra.mxu0 %vm34_vm0, %v39_v4  ;;  %v81_v21 = vld [vmem:[#allocation2 + $0x8] sm:$0xff]  ;;  %v258_v5 = vld [vmem:[%s378_s7] ss:$0 sm:$0xff] }
   0xa   :  { %125 = vmatpush.bf16.msra.mxu1 %v250_v7  ;;  %v160_v38 = vsub.f32 1.0, %v159_v37 }
   0xc   :  { %v161_v39 = vmul.f32 %v260_v36, %v160_v38 }
   0xe   :  { %126 = vmatpush.bf16.msra.mxu1 %v249_v8  ;;  %v162_v40 = vadd.f32 %v260_v36, %v161_v39 }
  0x10   :  { %v164_v41 = vsel %vm163_vm2, %v260_v36, %v162_v40 }
  0x86   :  { %v73_v10 = vpop.f32.mrf.mxu0 }
  0x87   :  { %v74_v12 = vadd.f32 %v255_v11, %v73_v10 }
  0x89   :  { %v78_v15 = vmax.f32 %v74_v12, 0.0 }
  0x8e   :  { %v75_v13 = vpop.f32.mrf.mxu0 }
  0x8f   :  { %v76_v14 = vadd.f32 %v255_v11, %v75_v13 }
  0x91   :  { %v79_v16 = vmax.f32 %v76_v14, 0.0 }
  0x93   :  { %v82_v17 = vpack.c.bf16 %v79_v16, %v78_v15 }
  0x95   :  { %246 = vmatmul.msk.bf16.vlgmr.msra.gmra.mxu1 %vm115_vm1, %v82_v17 }
 0x112   :  { %v128_v19 = vpop.f32.mrf.mxu1 }
 0x113   :  { %v133_v20 = vadd.f32 %v128_v19, %v80_v18 }
 0x115   :  { %135 = vst.msk [vmem:[#allocation2] sm:$0xff] %vm34_vm0, %v133_v20 }
 0x11a   :  { %v130_v23 = vpop.f32.mrf.mxu1 }
 0x11b   :  { %v134_v24 = vadd.f32 %v130_v23, %v81_v21 }
 0x11c   :  { %v140_v25 = vld [vmem:[#allocation2] sm:$0xff] }
 0x11d   :  { %136 = vst.msk [vmem:[#allocation2 + $0x8] sm:$0xff] %vm34_vm0, %v134_v24  ;;  %v146_v27 = vadd.f32 %v256_v22, %v140_v25 }
 0x11f   :  { %v150_v28 = vadd.f32 %v148_v26, %v146_v27 }
 0x121   :  { %v152_v29 = vsel %vm34_vm0, %v150_v28, 0.0 }
 0x122   :  { %153 = vadd.xlane.f32.xlu0 %v152_v29 }
 0x124   :  { %v141_v30 = vld [vmem:[#allocation2 + $0x8] sm:$0xff] }
 0x125   :  { %v147_v32 = vadd.f32 %v256_v22, %v141_v30 }
 0x127   :  { %v151_v33 = vadd.f32 %v149_v31, %v147_v32 }
 0x129   :  { %v155_v34 = vsel %vm34_vm0, %v151_v33, 0.0 }
 0x12a   :  { %156 = vadd.xlane.f32.xlu0 %v155_v34 }
 0x195   :  { %v154_v42 = vpop.xlane.xlu0 %153 }
 0x196   :  { %v165_v43 = vmul.f32 %v164_v41, %v154_v42 }
 0x198   :  { %v167_v44 = vsub.f32 %v150_v28, %v165_v43 }
 0x19a   :  { %v169_v45 = vmul.f32 %v167_v44, %v167_v44 }
 0x19c   :  { %v171_v46 = vsel %vm34_vm0, %v169_v45, 0.0 }
 0x19d   :  { %172 = vadd.xlane.f32.xlu1 %v171_v46  ;;  %v157_v47 = vpop.xlane.xlu0 %156 }
 0x19e   :  { %v166_v48 = vmul.f32 %v164_v41, %v157_v47 }
 0x1a0   :  { %v168_v49 = vsub.f32 %v151_v33, %v166_v48 }
 0x1a2   :  { %v170_v50 = vmul.f32 %v168_v49, %v168_v49 }
 0x1a4   :  { %v174_v51 = vsel %vm34_vm0, %v170_v50, 0.0 }
 0x1a5   :  { %175 = vadd.xlane.f32.xlu1 %v174_v51 }
 0x210   :  { %v173_v52 = vpop.xlane.xlu1 %172 }
 0x211   :  { %v177_v53 = vmul.f32 %v173_v52, %v164_v41 }
 0x213   :  { %v179_v54 = vadd.f32 1e-12, %v177_v53 }
 0x215   :  { %261 = vrsqrt.f32 %v179_v54  ;;  %vm187_vm4 = vweird.f32 %v179_v54 }
 0x218   :  { %v176_v55 = vpop.xlane.xlu1 %175 }
 0x219   :  { %v178_v56 = vmul.f32 %v176_v55, %v164_v41 }
 0x21b   :  { %v262_v57 = vpop.eup %261  ;;  %v180_v58 = vadd.f32 1e-12, %v178_v56 }
 0x21c   :  { %v182_v59 = vmul.f32 %v262_v57, %v179_v54  ;;  %vm188_vm3 = vweird.f32 %v262_v57 }
 0x21d   :  { %263 = vrsqrt.f32 %v180_v58  ;;  %vm189_vm5 = vmor %vm187_vm4, %vm188_vm3  ;;  %vm197_vm7 = vweird.f32 %v180_v58 }
 0x21e   :  { %v183_v60 = vmul.f32 %v262_v57, %v182_v59 }
 0x220   :  { %v184_v61 = vmul.f32 0.5, %v183_v60 }
 0x222   :  { %v185_v62 = vsub.f32 1.5, %v184_v61 }
 0x223   :  { %v264_v63 = vpop.eup %263 }
 0x224   :  { %v186_v0 = vmul.f32 %v262_v57, %v185_v62  ;;  %v192_v1 = vmul.f32 %v264_v63, %v180_v58  ;;  %vm198_vm6 = vweird.f32 %v264_v63 }
 0x225   :  { %vm199_vm8 = vmor %vm197_vm7, %vm198_vm6 }
 0x226   :  { %v190_v3 = vsel %vm189_vm5, %v262_v57, %v186_v0  ;;  %v193_v4 = vmul.f32 %v264_v63, %v192_v1 }
 0x227   :  { %v201_v6 = vmul.f32 %v190_v3, %v167_v44 }
 0x228   :  { %v194_v7 = vmul.f32 0.5, %v193_v4 }
 0x229   :  { %v207_v8 = vmul.f32 %v257_v2, %v201_v6 }
 0x22a   :  { %v195_v9 = vsub.f32 1.5, %v194_v7 }
 0x22b   :  { %v213_v10 = vadd.f32 %v258_v5, %v207_v8 }
 0x22c   :  { %v196_v11 = vmul.f32 %v264_v63, %v195_v9 }
 0x22d   :  { %215 = vst.msk [vmem:[%s379_s8] sm:$0xff] %vm34_vm0, %v213_v10 }
 0x22e   :  { %v200_v12 = vsel %vm199_vm8, %v264_v63, %v196_v11 }
 0x22f   :  { %v202_v13 = vmul.f32 %v200_v12, %v168_v49 }
 0x231   :  { %v208_v14 = vmul.f32 %v257_v2, %v202_v13 }
 0x233   :  { %v214_v15 = vadd.f32 %v258_v5, %v208_v14 }
 0x235   :  { %216 = vst.msk [vmem:[%s379_s8 + $0x8] sm:$0xff] %vm34_vm0, %v214_v15 }

</bundles_post_ra>
